<compile_context>
chip_gen: v5e
topology: v5e:2x2
jax: 0.10.0
libtpu: 0.0.40
codegen_flags: <defaults>
</compile_context>

<pallas_src>
import functools

import jax
import jax.numpy as jnp
from jax.experimental import pallas as pl
from jax.experimental.pallas import tpu as pltpu

FILTER_SIZES = (3, 13, 23, 33)
BLOCK_K = 3                      # conv inside conv_block
K_FUSED = max(FILTER_SIZES)      # 33: every kernel is zero-padded (centered) to this
PMAX = K_FUSED // 2              # 16: "same" padding of the fused conv
BN_EPS = 1e-5


def _base_scale_kernel(x_ref, w_ref, shift_ref, o_ref, patch_ref,
                       *, L, K, C_in, C_out, Cp):
    # x_ref     : (1, C_in, L)        input block, PyTorch NCL layout (f32)
    # w_ref     : (K*C_in, 2*Cp)      fused weights (BN scale + 1/4 mean folded in)
    # shift_ref : (1, 2*Cp)           per-channel BN shifts (f32)
    # o_ref     : (1, C_out, L//2)    final output block, PyTorch layout, unpadded
    # patch_ref : VMEM (K*C_in, L)    transposed im2col scratch, compute dtype

    xv = x_ref[0].astype(patch_ref.dtype)                     # (C_in, L)

    # ---- lane-dense im2col (channels-first, tap-major rows) -------------------
    # patch[t*C_in + c, l] = x[c, l + t - PMAX]  (zero outside [0, L))
    for t in range(K):                                        # static trip count
        d = t - PMAX                                          # input offset at l = 0
        r0 = t * C_in
        r1 = r0 + C_in
        valid = L - abs(d)
        if valid <= 0:                                        # whole tap out of range
            patch_ref[r0:r1, :] = jnp.zeros((C_in, L), patch_ref.dtype)
        elif d > 0:
            patch_ref[r0:r1, :valid] = xv[:, d:]
            patch_ref[r0:r1, valid:] = jnp.zeros((C_in, d), patch_ref.dtype)
        elif d < 0:
            h = -d
            patch_ref[r0:r1, :h] = jnp.zeros((C_in, h), patch_ref.dtype)
            patch_ref[r0:r1, h:] = xv[:, :valid]
        else:
            patch_ref[r0:r1, :] = xv

    # ---- single fused MXU contraction: both branches, all taps, all channels ---
    # (K*C_in = 132 pads to 256 on the MXU contraction dim; acceptable - MXU has slack.)
    y = jax.lax.dot_general(
        patch_ref[...], w_ref[...],
        dimension_numbers=(((0,), (0,)), ((), ())),
        preferred_element_type=jnp.float32)                   # (L, 2*Cp) f32

    # ---- epilogue in registers: shift (BN bias) -> ReLU -> MaxPool1d(2) -> sum --
    y = jnp.maximum(y + shift_ref[0].astype(jnp.float32)[None, :], 0.0)
    pooled = jnp.max(y.reshape(L // 2, 2, 2 * Cp), axis=1)    # (L//2, 2*Cp)
    # first Cp lanes = multi-scale branch, next Cp lanes = conv_block branch
    summed = pooled[:, :Cp] + pooled[:, Cp:]                  # (L//2, Cp)

    # transpose in-kernel (XLU slack) so the stored output is already (C_out, L//2)
    o_ref[0] = jnp.transpose(summed)[:C_out, :].astype(o_ref.dtype)


def _fuse_weights(params, C_out, Cp, dtype):
    """Fold the 4-way mean, BatchNorm scale and C_out padding into one weight matrix."""
    C_in = params["w1"].shape[1]

    def pad_taps(w):  # (C_out, C_in, k) -> (C_out, C_in, K_FUSED), centered
        k = w.shape[-1]
        off = (K_FUSED - k) // 2
        return jnp.pad(w, ((0, 0), (0, 0), (off, K_FUSED - k - off)))

    # mean of same-input "same" convs == conv with averaged (centered-padded) kernels
    w_ms = 0.25 * sum(pad_taps(params[f"w{i + 1}"]) for i in range(4))
    w_bl = pad_taps(params["wb"])

    # Fold BatchNorm (running stats, inference) scale into the weights.
    scale_a = params["bn_gamma"] / jnp.sqrt(params["bn_var"] + BN_EPS)
    shift_a = params["bn_beta"] - params["bn_mean"] * scale_a
    scale_b = params["bnb_gamma"] / jnp.sqrt(params["bnb_var"] + BN_EPS)
    shift_b = params["bnb_beta"] - params["bnb_mean"] * scale_b
    w_ms = w_ms * scale_a[:, None, None]
    w_bl = w_bl * scale_b[:, None, None]

    def to_mat(w):  # (C_out, C_in, K) -> (K*C_in, C_out), rows ordered tap-major
        return jnp.transpose(w, (2, 1, 0)).reshape(K_FUSED * C_in, C_out)

    def pad_cout(m):  # pad output channels to Cp (lane-dense MXU output)
        return jnp.pad(m, ((0, 0), (0, Cp - C_out)))

    w_full = jnp.concatenate([pad_cout(to_mat(w_ms)), pad_cout(to_mat(w_bl))],
                             axis=1)                                   # (K*C_in, 2*Cp)
    shift_full = jnp.concatenate([jnp.pad(shift_a, (0, Cp - C_out)),
                                  jnp.pad(shift_b, (0, Cp - C_out))])[None, :]
    return w_full.astype(dtype), shift_full.astype(jnp.float32)


def base_scale_forward(x_ncl, params, *, compute_dtype=jnp.bfloat16):
    """x_ncl: (N, C_in, L) float32, same convention as PyTorch Conv1d."""
    N, C_in, L = x_ncl.shape
    C_out = params["w1"].shape[0]
    assert L % 2 == 0

    Cp = max(128, ((C_out + 127) // 128) * 128)   # padded output channels per branch
    K = K_FUSED

    w_full, shift_full = _fuse_weights(params, C_out, Cp, compute_dtype)

    # VMEM budget: raise the scoped limit above the 32 MiB default when L is large
    # (v5e/v6e have 128 MiB physical); cap below v7x's 64 MiB with headroom.
    cbytes = jnp.dtype(compute_dtype).itemsize
    est = (2 * C_in * L * x_ncl.dtype.itemsize          # x block (double buffered)
           + 2 * C_out * (L // 2) * x_ncl.dtype.itemsize  # out block
           + 2 * K * C_in * 2 * Cp * cbytes              # weights
           + K * C_in * L * cbytes                       # im2col scratch
           + 3 * L * 2 * Cp * 4)                         # matmul result + epilogue temps
    vmem_limit = int(min(56 * 1024 * 1024, max(32 * 1024 * 1024, 2 * est)))

    kernel = functools.partial(_base_scale_kernel,
                               L=L, K=K, C_in=C_in, C_out=C_out, Cp=Cp)

    out = pl.pallas_call(
        kernel,
        out_shape=jax.ShapeDtypeStruct((N, C_out, L // 2), x_ncl.dtype),
        grid_spec=pltpu.PrefetchScalarGridSpec(
            num_scalar_prefetch=0,
            grid=(N,),
            in_specs=[
                pl.BlockSpec((1, C_in, L), lambda b: (b, 0, 0)),
                pl.BlockSpec((K * C_in, 2 * Cp), lambda b: (0, 0)),
                pl.BlockSpec((1, 2 * Cp), lambda b: (0, 0)),
            ],
            out_specs=pl.BlockSpec((1, C_out, L // 2), lambda b: (b, 0, 0)),
            scratch_shapes=[
                pltpu.VMEM((K * C_in, L), compute_dtype),   # transposed im2col patches
            ],
        ),
        compiler_params=pltpu.CompilerParams(
            dimension_semantics=("parallel",),              # batches are independent
            vmem_limit_bytes=vmem_limit,
        ),
    )(x_ncl, w_full, shift_full)

    # Already (N, C_out, L//2) in PyTorch layout; no wrapper post-processing.
    return out


def ref_forward(x, params):
    """Pure-JAX reference (XLA convs) for correctness checking."""
    def conv1d(x, w, pad):
        return jax.lax.conv_general_dilated(
            x.astype(jnp.float32), w.astype(jnp.float32), (1,), [(pad, pad)],
            dimension_numbers=("NCH", "OIH", "NCH"))

    def bn(y, g, b, m, v):
        inv = g / jnp.sqrt(v + BN_EPS)
        return y * inv[None, :, None] + (b - m * inv)[None, :, None]

    def maxpool2(y):
        n, c, l = y.shape
        return y.reshape(n, c, l // 2, 2).max(axis=-1)

    ys = [conv1d(x, params[f"w{i + 1}"], FILTER_SIZES[i] // 2) for i in range(4)]
    branch = (ys[0] + ys[1] + ys[2] + ys[3]) / 4.0
    branch = maxpool2(jax.nn.relu(
        bn(branch, params["bn_gamma"], params["bn_beta"],
           params["bn_mean"], params["bn_var"])))
    block = conv1d(x, params["wb"], BLOCK_K // 2)
    block = maxpool2(jax.nn.relu(
        bn(block, params["bnb_gamma"], params["bnb_beta"],
           params["bnb_mean"], params["bnb_var"])))
    return block + branch


def make_params(key, c_in, c_out):
    ks = jax.random.split(key, 16)
    p = {}
    for i, k in enumerate(FILTER_SIZES):
        p[f"w{i + 1}"] = 0.1 * jax.random.normal(ks[i], (c_out, c_in, k), jnp.float32)
    p["wb"] = 0.1 * jax.random.normal(ks[4], (c_out, c_in, BLOCK_K), jnp.float32)
    # BatchNorm for the multi-scale branch (self.bn)
    p["bn_gamma"] = 1.0 + 0.1 * jax.random.normal(ks[5], (c_out,), jnp.float32)
    p["bn_beta"] = 0.1 * jax.random.normal(ks[6], (c_out,), jnp.float32)
    p["bn_mean"] = 0.05 * jax.random.normal(ks[7], (c_out,), jnp.float32)
    p["bn_var"] = 1.0 + 0.1 * jnp.abs(jax.random.normal(ks[8], (c_out,), jnp.float32))
    # BatchNorm inside conv_block
    p["bnb_gamma"] = 1.0 + 0.1 * jax.random.normal(ks[9], (c_out,), jnp.float32)
    p["bnb_beta"] = 0.1 * jax.random.normal(ks[10], (c_out,), jnp.float32)
    p["bnb_mean"] = 0.05 * jax.random.normal(ks[11], (c_out,), jnp.float32)
    p["bnb_var"] = 1.0 + 0.1 * jnp.abs(jax.random.normal(ks[12], (c_out,), jnp.float32))
    return p


if __name__ == "__main__":
    N, C_IN, C_MID, L = 2, 4, 8, 16
    key = jax.random.PRNGKey(0)
    kx, kp = jax.random.split(key)
    x = jax.random.normal(kx, (N, C_IN, L), jnp.float32)   # PyTorch NCL layout
    params = make_params(kp, C_IN, C_MID)

    ref = jax.block_until_ready(ref_forward(x, params))

    # f32 MXU path: tight tolerance check.
    out_f32 = jax.block_until_ready(
        base_scale_forward(x, params, compute_dtype=jnp.float32))
    assert out_f32.shape == (N, C_MID, L // 2), out_f32.shape
    assert jnp.allclose(out_f32, ref, rtol=1e-4, atol=1e-4), \
        float(jnp.max(jnp.abs(out_f32 - ref)))

    # bf16 MXU path (default; recommended on v5e/v6e/v7x): looser tolerance.
    out_bf16 = jax.block_until_ready(
        base_scale_forward(x, params, compute_dtype=jnp.bfloat16))
    assert out_bf16.shape == (N, C_MID, L // 2), out_bf16.shape
    assert jnp.allclose(out_bf16, ref, rtol=5e-2, atol=5e-2), \
        float(jnp.max(jnp.abs(out_bf16 - ref)))

    print("KERNEL_OK")
</pallas_src>

<mosaic_0001>
module attributes {stable_mosaic.version = 11 : i64} {
  func.func @_base_scale_kernel(%arg0: i32, %arg1: memref<1x4x16xf32, #tpu.memory_space<vmem>>, %arg2: memref<132x256xf32, #tpu.memory_space<vmem>>, %arg3: memref<1x256xf32, #tpu.memory_space<vmem>>, %arg4: memref<1x8x8xf32, #tpu.memory_space<vmem>>, %arg5: memref<132x16xf32, #tpu.memory_space<vmem>>) attributes {dimension_semantics = [#tpu.dimension_semantics<parallel>], iteration_bounds = array<i64: 2>, scalar_prefetch = 0 : i64, scratch_operands = 1 : i64, tpu.core_type = #tpu.core_type<tc>, window_params = [{transform_indices = @transform_0, window_bounds = array<i64: 1, 4, 16>}, {pipeline_mode = #tpu.pipeline_mode<synchronous>, transform_indices = @transform_1, window_bounds = array<i64: 132, 256>}, {pipeline_mode = #tpu.pipeline_mode<synchronous>, transform_indices = @transform_2, window_bounds = array<i64: 1, 256>}, {transform_indices = @transform_3, window_bounds = array<i64: 1, 8, 8>}]} {
    %c0 = arith.constant 0 : index
    %c0_0 = arith.constant 0 : index
    %c0_1 = arith.constant 0 : index
    %0 = vector.load %arg1[%c0, %c0_0, %c0_1] : memref<1x4x16xf32, #tpu.memory_space<vmem>>, vector<1x4x16xf32>
    %1 = vector.shape_cast %0 : vector<1x4x16xf32> to vector<4x16xf32>
    %cst = arith.constant 0.000000e+00 : f32
    %2 = vector.broadcast %cst : f32 to vector<4x16xf32>
    %c0_2 = arith.constant 0 : index
    %c0_3 = arith.constant 0 : index
    %3 = vector.load %arg5[%c0_2, %c0_3] : memref<132x16xf32, #tpu.memory_space<vmem>>, vector<4x16xf32>
    tpu.vector_store %arg5[%c0_2, %c0_3], %2 {strides = array<i32>} : memref<132x16xf32, #tpu.memory_space<vmem>>, vector<4x16xf32>,
    %cst_4 = arith.constant 0.000000e+00 : f32
    %4 = vector.broadcast %cst_4 : f32 to vector<4x15xf32>
    %c4 = arith.constant 4 : index
    %c0_5 = arith.constant 0 : index
    %5 = vector.load %arg5[%c4, %c0_5] : memref<132x16xf32, #tpu.memory_space<vmem>>, vector<4x15xf32>
    tpu.vector_store %arg5[%c4, %c0_5], %4 {strides = array<i32>} : memref<132x16xf32, #tpu.memory_space<vmem>>, vector<4x15xf32>,
    %6 = vector.extract_strided_slice %1 {offsets = [0, 0], sizes = [4, 1], strides = [1, 1]} : vector<4x16xf32> to vector<4x1xf32>
    %c4_6 = arith.constant 4 : index
    %c15 = arith.constant 15 : index
    %7 = vector.load %arg5[%c4_6, %c15] : memref<132x16xf32, #tpu.memory_space<vmem>>, vector<4x1xf32>
    tpu.vector_store %arg5[%c4_6, %c15], %6 {strides = array<i32>} : memref<132x16xf32, #tpu.memory_space<vmem>>, vector<4x1xf32>,
    %cst_7 = arith.constant 0.000000e+00 : f32
    %8 = vector.broadcast %cst_7 : f32 to vector<4x14xf32>
    %c8 = arith.constant 8 : index
    %c0_8 = arith.constant 0 : index
    %9 = vector.load %arg5[%c8, %c0_8] : memref<132x16xf32, #tpu.memory_space<vmem>>, vector<4x14xf32>
    tpu.vector_store %arg5[%c8, %c0_8], %8 {strides = array<i32>} : memref<132x16xf32, #tpu.memory_space<vmem>>, vector<4x14xf32>,
    %10 = vector.extract_strided_slice %1 {offsets = [0, 0], sizes = [4, 2], strides = [1, 1]} : vector<4x16xf32> to vector<4x2xf32>
    %c8_9 = arith.constant 8 : index
    %c14 = arith.constant 14 : index
    %11 = vector.load %arg5[%c8_9, %c14] : memref<132x16xf32, #tpu.memory_space<vmem>>, vector<4x2xf32>
    tpu.vector_store %arg5[%c8_9, %c14], %10 {strides = array<i32>} : memref<132x16xf32, #tpu.memory_space<vmem>>, vector<4x2xf32>,
    %cst_10 = arith.constant 0.000000e+00 : f32
    %12 = vector.broadcast %cst_10 : f32 to vector<4x13xf32>
    %c12 = arith.constant 12 : index
    %c0_11 = arith.constant 0 : index
    %13 = vector.load %arg5[%c12, %c0_11] : memref<132x16xf32, #tpu.memory_space<vmem>>, vector<4x13xf32>
    tpu.vector_store %arg5[%c12, %c0_11], %12 {strides = array<i32>} : memref<132x16xf32, #tpu.memory_space<vmem>>, vector<4x13xf32>,
    %14 = vector.extract_strided_slice %1 {offsets = [0, 0], sizes = [4, 3], strides = [1, 1]} : vector<4x16xf32> to vector<4x3xf32>
    %c12_12 = arith.constant 12 : index
    %c13 = arith.constant 13 : index
    %15 = vector.load %arg5[%c12_12, %c13] : memref<132x16xf32, #tpu.memory_space<vmem>>, vector<4x3xf32>
    tpu.vector_store %arg5[%c12_12, %c13], %14 {strides = array<i32>} : memref<132x16xf32, #tpu.memory_space<vmem>>, vector<4x3xf32>,
    %cst_13 = arith.constant 0.000000e+00 : f32
    %16 = vector.broadcast %cst_13 : f32 to vector<4x12xf32>
    %c16 = arith.constant 16 : index
    %c0_14 = arith.constant 0 : index
    %17 = vector.load %arg5[%c16, %c0_14] : memref<132x16xf32, #tpu.memory_space<vmem>>, vector<4x12xf32>
    tpu.vector_store %arg5[%c16, %c0_14], %16 {strides = array<i32>} : memref<132x16xf32, #tpu.memory_space<vmem>>, vector<4x12xf32>,
    %18 = vector.extract_strided_slice %1 {offsets = [0, 0], sizes = [4, 4], strides = [1, 1]} : vector<4x16xf32> to vector<4x4xf32>
    %c16_15 = arith.constant 16 : index
    %c12_16 = arith.constant 12 : index
    %19 = vector.load %arg5[%c16_15, %c12_16] : memref<132x16xf32, #tpu.memory_space<vmem>>, vector<4x4xf32>
    tpu.vector_store %arg5[%c16_15, %c12_16], %18 {strides = array<i32>} : memref<132x16xf32, #tpu.memory_space<vmem>>, vector<4x4xf32>,
    %cst_17 = arith.constant 0.000000e+00 : f32
    %20 = vector.broadcast %cst_17 : f32 to vector<4x11xf32>
    %c20 = arith.constant 20 : index
    %c0_18 = arith.constant 0 : index
    %21 = vector.load %arg5[%c20, %c0_18] : memref<132x16xf32, #tpu.memory_space<vmem>>, vector<4x11xf32>
    tpu.vector_store %arg5[%c20, %c0_18], %20 {strides = array<i32>} : memref<132x16xf32, #tpu.memory_space<vmem>>, vector<4x11xf32>,
    %22 = vector.extract_strided_slice %1 {offsets = [0, 0], sizes = [4, 5], strides = [1, 1]} : vector<4x16xf32> to vector<4x5xf32>
    %c20_19 = arith.constant 20 : index
    %c11 = arith.constant 11 : index
    %23 = vector.load %arg5[%c20_19, %c11] : memref<132x16xf32, #tpu.memory_space<vmem>>, vector<4x5xf32>
    tpu.vector_store %arg5[%c20_19, %c11], %22 {strides = array<i32>} : memref<132x16xf32, #tpu.memory_space<vmem>>, vector<4x5xf32>,
    %cst_20 = arith.constant 0.000000e+00 : f32
    %24 = vector.broadcast %cst_20 : f32 to vector<4x10xf32>
    %c24 = arith.constant 24 : index
    %c0_21 = arith.constant 0 : index
    %25 = vector.load %arg5[%c24, %c0_21] : memref<132x16xf32, #tpu.memory_space<vmem>>, vector<4x10xf32>
    tpu.vector_store %arg5[%c24, %c0_21], %24 {strides = array<i32>} : memref<132x16xf32, #tpu.memory_space<vmem>>, vector<4x10xf32>,
    %26 = vector.extract_strided_slice %1 {offsets = [0, 0], sizes = [4, 6], strides = [1, 1]} : vector<4x16xf32> to vector<4x6xf32>
    %c24_22 = arith.constant 24 : index
    %c10 = arith.constant 10 : index
    %27 = vector.load %arg5[%c24_22, %c10] : memref<132x16xf32, #tpu.memory_space<vmem>>, vector<4x6xf32>
    tpu.vector_store %arg5[%c24_22, %c10], %26 {strides = array<i32>} : memref<132x16xf32, #tpu.memory_space<vmem>>, vector<4x6xf32>,
    %cst_23 = arith.constant 0.000000e+00 : f32
    %28 = vector.broadcast %cst_23 : f32 to vector<4x9xf32>
    %c28 = arith.constant 28 : index
    %c0_24 = arith.constant 0 : index
    %29 = vector.load %arg5[%c28, %c0_24] : memref<132x16xf32, #tpu.memory_space<vmem>>, vector<4x9xf32>
    tpu.vector_store %arg5[%c28, %c0_24], %28 {strides = array<i32>} : memref<132x16xf32, #tpu.memory_space<vmem>>, vector<4x9xf32>,
    %30 = vector.extract_strided_slice %1 {offsets = [0, 0], sizes = [4, 7], strides = [1, 1]} : vector<4x16xf32> to vector<4x7xf32>
    %c28_25 = arith.constant 28 : index
    %c9 = arith.constant 9 : index
    %31 = vector.load %arg5[%c28_25, %c9] : memref<132x16xf32, #tpu.memory_space<vmem>>, vector<4x7xf32>
    tpu.vector_store %arg5[%c28_25, %c9], %30 {strides = array<i32>} : memref<132x16xf32, #tpu.memory_space<vmem>>, vector<4x7xf32>,
    %cst_26 = arith.constant 0.000000e+00 : f32
    %32 = vector.broadcast %cst_26 : f32 to vector<4x8xf32>
    %c32 = arith.constant 32 : index
    %c0_27 = arith.constant 0 : index
    %33 = vector.load %arg5[%c32, %c0_27] : memref<132x16xf32, #tpu.memory_space<vmem>>, vector<4x8xf32>
    tpu.vector_store %arg5[%c32, %c0_27], %32 {strides = array<i32>} : memref<132x16xf32, #tpu.memory_space<vmem>>, vector<4x8xf32>,
    %34 = vector.extract_strided_slice %1 {offsets = [0, 0], sizes = [4, 8], strides = [1, 1]} : vector<4x16xf32> to vector<4x8xf32>
    %c32_28 = arith.constant 32 : index
    %c8_29 = arith.constant 8 : index
    %35 = vector.load %arg5[%c32_28, %c8_29] : memref<132x16xf32, #tpu.memory_space<vmem>>, vector<4x8xf32>
    tpu.vector_store %arg5[%c32_28, %c8_29], %34 {strides = array<i32>} : memref<132x16xf32, #tpu.memory_space<vmem>>, vector<4x8xf32>,
    %cst_30 = arith.constant 0.000000e+00 : f32
    %36 = vector.broadcast %cst_30 : f32 to vector<4x7xf32>
    %c36 = arith.constant 36 : index
    %c0_31 = arith.constant 0 : index
    %37 = vector.load %arg5[%c36, %c0_31] : memref<132x16xf32, #tpu.memory_space<vmem>>, vector<4x7xf32>
    tpu.vector_store %arg5[%c36, %c0_31], %36 {strides = array<i32>} : memref<132x16xf32, #tpu.memory_space<vmem>>, vector<4x7xf32>,
    %38 = vector.extract_strided_slice %1 {offsets = [0, 0], sizes = [4, 9], strides = [1, 1]} : vector<4x16xf32> to vector<4x9xf32>
    %c36_32 = arith.constant 36 : index
    %c7 = arith.constant 7 : index
    %39 = vector.load %arg5[%c36_32, %c7] : memref<132x16xf32, #tpu.memory_space<vmem>>, vector<4x9xf32>
    tpu.vector_store %arg5[%c36_32, %c7], %38 {strides = array<i32>} : memref<132x16xf32, #tpu.memory_space<vmem>>, vector<4x9xf32>,
    %cst_33 = arith.constant 0.000000e+00 : f32
    %40 = vector.broadcast %cst_33 : f32 to vector<4x6xf32>
    %c40 = arith.constant 40 : index
    %c0_34 = arith.constant 0 : index
    %41 = vector.load %arg5[%c40, %c0_34] : memref<132x16xf32, #tpu.memory_space<vmem>>, vector<4x6xf32>
    tpu.vector_store %arg5[%c40, %c0_34], %40 {strides = array<i32>} : memref<132x16xf32, #tpu.memory_space<vmem>>, vector<4x6xf32>,
    %42 = vector.extract_strided_slice %1 {offsets = [0, 0], sizes = [4, 10], strides = [1, 1]} : vector<4x16xf32> to vector<4x10xf32>
    %c40_35 = arith.constant 40 : index
    %c6 = arith.constant 6 : index
    %43 = vector.load %arg5[%c40_35, %c6] : memref<132x16xf32, #tpu.memory_space<vmem>>, vector<4x10xf32>
    tpu.vector_store %arg5[%c40_35, %c6], %42 {strides = array<i32>} : memref<132x16xf32, #tpu.memory_space<vmem>>, vector<4x10xf32>,
    %cst_36 = arith.constant 0.000000e+00 : f32
    %44 = vector.broadcast %cst_36 : f32 to vector<4x5xf32>
    %c44 = arith.constant 44 : index
    %c0_37 = arith.constant 0 : index
    %45 = vector.load %arg5[%c44, %c0_37] : memref<132x16xf32, #tpu.memory_space<vmem>>, vector<4x5xf32>
    tpu.vector_store %arg5[%c44, %c0_37], %44 {strides = array<i32>} : memref<132x16xf32, #tpu.memory_space<vmem>>, vector<4x5xf32>,
    %46 = vector.extract_strided_slice %1 {offsets = [0, 0], sizes = [4, 11], strides = [1, 1]} : vector<4x16xf32> to vector<4x11xf32>
    %c44_38 = arith.constant 44 : index
    %c5 = arith.constant 5 : index
    %47 = vector.load %arg5[%c44_38, %c5] : memref<132x16xf32, #tpu.memory_space<vmem>>, vector<4x11xf32>
    tpu.vector_store %arg5[%c44_38, %c5], %46 {strides = array<i32>} : memref<132x16xf32, #tpu.memory_space<vmem>>, vector<4x11xf32>,
    %cst_39 = arith.constant 0.000000e+00 : f32
    %48 = vector.broadcast %cst_39 : f32 to vector<4x4xf32>
    %c48 = arith.constant 48 : index
    %c0_40 = arith.constant 0 : index
    %49 = vector.load %arg5[%c48, %c0_40] : memref<132x16xf32, #tpu.memory_space<vmem>>, vector<4x4xf32>
    tpu.vector_store %arg5[%c48, %c0_40], %48 {strides = array<i32>} : memref<132x16xf32, #tpu.memory_space<vmem>>, vector<4x4xf32>,
    %50 = vector.extract_strided_slice %1 {offsets = [0, 0], sizes = [4, 12], strides = [1, 1]} : vector<4x16xf32> to vector<4x12xf32>
    %c48_41 = arith.constant 48 : index
    %c4_42 = arith.constant 4 : index
    %51 = vector.load %arg5[%c48_41, %c4_42] : memref<132x16xf32, #tpu.memory_space<vmem>>, vector<4x12xf32>
    tpu.vector_store %arg5[%c48_41, %c4_42], %50 {strides = array<i32>} : memref<132x16xf32, #tpu.memory_space<vmem>>, vector<4x12xf32>,
    %cst_43 = arith.constant 0.000000e+00 : f32
    %52 = vector.broadcast %cst_43 : f32 to vector<4x3xf32>
    %c52 = arith.constant 52 : index
    %c0_44 = arith.constant 0 : index
    %53 = vector.load %arg5[%c52, %c0_44] : memref<132x16xf32, #tpu.memory_space<vmem>>, vector<4x3xf32>
    tpu.vector_store %arg5[%c52, %c0_44], %52 {strides = array<i32>} : memref<132x16xf32, #tpu.memory_space<vmem>>, vector<4x3xf32>,
    %54 = vector.extract_strided_slice %1 {offsets = [0, 0], sizes = [4, 13], strides = [1, 1]} : vector<4x16xf32> to vector<4x13xf32>
    %c52_45 = arith.constant 52 : index
    %c3 = arith.constant 3 : index
    %55 = vector.load %arg5[%c52_45, %c3] : memref<132x16xf32, #tpu.memory_space<vmem>>, vector<4x13xf32>
    tpu.vector_store %arg5[%c52_45, %c3], %54 {strides = array<i32>} : memref<132x16xf32, #tpu.memory_space<vmem>>, vector<4x13xf32>,
    %cst_46 = arith.constant 0.000000e+00 : f32
    %56 = vector.broadcast %cst_46 : f32 to vector<4x2xf32>
    %c56 = arith.constant 56 : index
    %c0_47 = arith.constant 0 : index
    %57 = vector.load %arg5[%c56, %c0_47] : memref<132x16xf32, #tpu.memory_space<vmem>>, vector<4x2xf32>
    tpu.vector_store %arg5[%c56, %c0_47], %56 {strides = array<i32>} : memref<132x16xf32, #tpu.memory_space<vmem>>, vector<4x2xf32>,
    %58 = vector.extract_strided_slice %1 {offsets = [0, 0], sizes = [4, 14], strides = [1, 1]} : vector<4x16xf32> to vector<4x14xf32>
    %c56_48 = arith.constant 56 : index
    %c2 = arith.constant 2 : index
    %59 = vector.load %arg5[%c56_48, %c2] : memref<132x16xf32, #tpu.memory_space<vmem>>, vector<4x14xf32>
    tpu.vector_store %arg5[%c56_48, %c2], %58 {strides = array<i32>} : memref<132x16xf32, #tpu.memory_space<vmem>>, vector<4x14xf32>,
    %cst_49 = arith.constant 0.000000e+00 : f32
    %60 = vector.broadcast %cst_49 : f32 to vector<4x1xf32>
    %c60 = arith.constant 60 : index
    %c0_50 = arith.constant 0 : index
    %61 = vector.load %arg5[%c60, %c0_50] : memref<132x16xf32, #tpu.memory_space<vmem>>, vector<4x1xf32>
    tpu.vector_store %arg5[%c60, %c0_50], %60 {strides = array<i32>} : memref<132x16xf32, #tpu.memory_space<vmem>>, vector<4x1xf32>,
    %62 = vector.extract_strided_slice %1 {offsets = [0, 0], sizes = [4, 15], strides = [1, 1]} : vector<4x16xf32> to vector<4x15xf32>
    %c60_51 = arith.constant 60 : index
    %c1 = arith.constant 1 : index
    %63 = vector.load %arg5[%c60_51, %c1] : memref<132x16xf32, #tpu.memory_space<vmem>>, vector<4x15xf32>
    tpu.vector_store %arg5[%c60_51, %c1], %62 {strides = array<i32>} : memref<132x16xf32, #tpu.memory_space<vmem>>, vector<4x15xf32>,
    %c64 = arith.constant 64 : index
    %c0_52 = arith.constant 0 : index
    %64 = vector.load %arg5[%c64, %c0_52] : memref<132x16xf32, #tpu.memory_space<vmem>>, vector<4x16xf32>
    tpu.vector_store %arg5[%c64, %c0_52], %1 {strides = array<i32>} : memref<132x16xf32, #tpu.memory_space<vmem>>, vector<4x16xf32>,
    %65 = vector.extract_strided_slice %1 {offsets = [0, 1], sizes = [4, 15], strides = [1, 1]} : vector<4x16xf32> to vector<4x15xf32>
    %c68 = arith.constant 68 : index
    %c0_53 = arith.constant 0 : index
    %66 = vector.load %arg5[%c68, %c0_53] : memref<132x16xf32, #tpu.memory_space<vmem>>, vector<4x15xf32>
    tpu.vector_store %arg5[%c68, %c0_53], %65 {strides = array<i32>} : memref<132x16xf32, #tpu.memory_space<vmem>>, vector<4x15xf32>,
    %cst_54 = arith.constant 0.000000e+00 : f32
    %67 = vector.broadcast %cst_54 : f32 to vector<4x1xf32>
    %c68_55 = arith.constant 68 : index
    %c15_56 = arith.constant 15 : index
    %68 = vector.load %arg5[%c68_55, %c15_56] : memref<132x16xf32, #tpu.memory_space<vmem>>, vector<4x1xf32>
    tpu.vector_store %arg5[%c68_55, %c15_56], %67 {strides = array<i32>} : memref<132x16xf32, #tpu.memory_space<vmem>>, vector<4x1xf32>,
    %69 = vector.extract_strided_slice %1 {offsets = [0, 2], sizes = [4, 14], strides = [1, 1]} : vector<4x16xf32> to vector<4x14xf32>
    %c72 = arith.constant 72 : index
    %c0_57 = arith.constant 0 : index
    %70 = vector.load %arg5[%c72, %c0_57] : memref<132x16xf32, #tpu.memory_space<vmem>>, vector<4x14xf32>
    tpu.vector_store %arg5[%c72, %c0_57], %69 {strides = array<i32>} : memref<132x16xf32, #tpu.memory_space<vmem>>, vector<4x14xf32>,
    %cst_58 = arith.constant 0.000000e+00 : f32
    %71 = vector.broadcast %cst_58 : f32 to vector<4x2xf32>
    %c72_59 = arith.constant 72 : index
    %c14_60 = arith.constant 14 : index
    %72 = vector.load %arg5[%c72_59, %c14_60] : memref<132x16xf32, #tpu.memory_space<vmem>>, vector<4x2xf32>
    tpu.vector_store %arg5[%c72_59, %c14_60], %71 {strides = array<i32>} : memref<132x16xf32, #tpu.memory_space<vmem>>, vector<4x2xf32>,
    %73 = vector.extract_strided_slice %1 {offsets = [0, 3], sizes = [4, 13], strides = [1, 1]} : vector<4x16xf32> to vector<4x13xf32>
    %c76 = arith.constant 76 : index
    %c0_61 = arith.constant 0 : index
    %74 = vector.load %arg5[%c76, %c0_61] : memref<132x16xf32, #tpu.memory_space<vmem>>, vector<4x13xf32>
    tpu.vector_store %arg5[%c76, %c0_61], %73 {strides = array<i32>} : memref<132x16xf32, #tpu.memory_space<vmem>>, vector<4x13xf32>,
    %cst_62 = arith.constant 0.000000e+00 : f32
    %75 = vector.broadcast %cst_62 : f32 to vector<4x3xf32>
    %c76_63 = arith.constant 76 : index
    %c13_64 = arith.constant 13 : index
    %76 = vector.load %arg5[%c76_63, %c13_64] : memref<132x16xf32, #tpu.memory_space<vmem>>, vector<4x3xf32>
    tpu.vector_store %arg5[%c76_63, %c13_64], %75 {strides = array<i32>} : memref<132x16xf32, #tpu.memory_space<vmem>>, vector<4x3xf32>,
    %77 = vector.extract_strided_slice %1 {offsets = [0, 4], sizes = [4, 12], strides = [1, 1]} : vector<4x16xf32> to vector<4x12xf32>
    %c80 = arith.constant 80 : index
    %c0_65 = arith.constant 0 : index
    %78 = vector.load %arg5[%c80, %c0_65] : memref<132x16xf32, #tpu.memory_space<vmem>>, vector<4x12xf32>
    tpu.vector_store %arg5[%c80, %c0_65], %77 {strides = array<i32>} : memref<132x16xf32, #tpu.memory_space<vmem>>, vector<4x12xf32>,
    %cst_66 = arith.constant 0.000000e+00 : f32
    %79 = vector.broadcast %cst_66 : f32 to vector<4x4xf32>
    %c80_67 = arith.constant 80 : index
    %c12_68 = arith.constant 12 : index
    %80 = vector.load %arg5[%c80_67, %c12_68] : memref<132x16xf32, #tpu.memory_space<vmem>>, vector<4x4xf32>
    tpu.vector_store %arg5[%c80_67, %c12_68], %79 {strides = array<i32>} : memref<132x16xf32, #tpu.memory_space<vmem>>, vector<4x4xf32>,
    %81 = vector.extract_strided_slice %1 {offsets = [0, 5], sizes = [4, 11], strides = [1, 1]} : vector<4x16xf32> to vector<4x11xf32>
    %c84 = arith.constant 84 : index
    %c0_69 = arith.constant 0 : index
    %82 = vector.load %arg5[%c84, %c0_69] : memref<132x16xf32, #tpu.memory_space<vmem>>, vector<4x11xf32>
    tpu.vector_store %arg5[%c84, %c0_69], %81 {strides = array<i32>} : memref<132x16xf32, #tpu.memory_space<vmem>>, vector<4x11xf32>,
    %cst_70 = arith.constant 0.000000e+00 : f32
    %83 = vector.broadcast %cst_70 : f32 to vector<4x5xf32>
    %c84_71 = arith.constant 84 : index
    %c11_72 = arith.constant 11 : index
    %84 = vector.load %arg5[%c84_71, %c11_72] : memref<132x16xf32, #tpu.memory_space<vmem>>, vector<4x5xf32>
    tpu.vector_store %arg5[%c84_71, %c11_72], %83 {strides = array<i32>} : memref<132x16xf32, #tpu.memory_space<vmem>>, vector<4x5xf32>,
    %85 = vector.extract_strided_slice %1 {offsets = [0, 6], sizes = [4, 10], strides = [1, 1]} : vector<4x16xf32> to vector<4x10xf32>
    %c88 = arith.constant 88 : index
    %c0_73 = arith.constant 0 : index
    %86 = vector.load %arg5[%c88, %c0_73] : memref<132x16xf32, #tpu.memory_space<vmem>>, vector<4x10xf32>
    tpu.vector_store %arg5[%c88, %c0_73], %85 {strides = array<i32>} : memref<132x16xf32, #tpu.memory_space<vmem>>, vector<4x10xf32>,
    %cst_74 = arith.constant 0.000000e+00 : f32
    %87 = vector.broadcast %cst_74 : f32 to vector<4x6xf32>
    %c88_75 = arith.constant 88 : index
    %c10_76 = arith.constant 10 : index
    %88 = vector.load %arg5[%c88_75, %c10_76] : memref<132x16xf32, #tpu.memory_space<vmem>>, vector<4x6xf32>
    tpu.vector_store %arg5[%c88_75, %c10_76], %87 {strides = array<i32>} : memref<132x16xf32, #tpu.memory_space<vmem>>, vector<4x6xf32>,
    %89 = vector.extract_strided_slice %1 {offsets = [0, 7], sizes = [4, 9], strides = [1, 1]} : vector<4x16xf32> to vector<4x9xf32>
    %c92 = arith.constant 92 : index
    %c0_77 = arith.constant 0 : index
    %90 = vector.load %arg5[%c92, %c0_77] : memref<132x16xf32, #tpu.memory_space<vmem>>, vector<4x9xf32>
    tpu.vector_store %arg5[%c92, %c0_77], %89 {strides = array<i32>} : memref<132x16xf32, #tpu.memory_space<vmem>>, vector<4x9xf32>,
    %cst_78 = arith.constant 0.000000e+00 : f32
    %91 = vector.broadcast %cst_78 : f32 to vector<4x7xf32>
    %c92_79 = arith.constant 92 : index
    %c9_80 = arith.constant 9 : index
    %92 = vector.load %arg5[%c92_79, %c9_80] : memref<132x16xf32, #tpu.memory_space<vmem>>, vector<4x7xf32>
    tpu.vector_store %arg5[%c92_79, %c9_80], %91 {strides = array<i32>} : memref<132x16xf32, #tpu.memory_space<vmem>>, vector<4x7xf32>,
    %93 = vector.extract_strided_slice %1 {offsets = [0, 8], sizes = [4, 8], strides = [1, 1]} : vector<4x16xf32> to vector<4x8xf32>
    %c96 = arith.constant 96 : index
    %c0_81 = arith.constant 0 : index
    %94 = vector.load %arg5[%c96, %c0_81] : memref<132x16xf32, #tpu.memory_space<vmem>>, vector<4x8xf32>
    tpu.vector_store %arg5[%c96, %c0_81], %93 {strides = array<i32>} : memref<132x16xf32, #tpu.memory_space<vmem>>, vector<4x8xf32>,
    %cst_82 = arith.constant 0.000000e+00 : f32
    %95 = vector.broadcast %cst_82 : f32 to vector<4x8xf32>
    %c96_83 = arith.constant 96 : index
    %c8_84 = arith.constant 8 : index
    %96 = vector.load %arg5[%c96_83, %c8_84] : memref<132x16xf32, #tpu.memory_space<vmem>>, vector<4x8xf32>
    tpu.vector_store %arg5[%c96_83, %c8_84], %95 {strides = array<i32>} : memref<132x16xf32, #tpu.memory_space<vmem>>, vector<4x8xf32>,
    %97 = vector.extract_strided_slice %1 {offsets = [0, 9], sizes = [4, 7], strides = [1, 1]} : vector<4x16xf32> to vector<4x7xf32>
    %c100 = arith.constant 100 : index
    %c0_85 = arith.constant 0 : index
    %98 = vector.load %arg5[%c100, %c0_85] : memref<132x16xf32, #tpu.memory_space<vmem>>, vector<4x7xf32>
    tpu.vector_store %arg5[%c100, %c0_85], %97 {strides = array<i32>} : memref<132x16xf32, #tpu.memory_space<vmem>>, vector<4x7xf32>,
    %cst_86 = arith.constant 0.000000e+00 : f32
    %99 = vector.broadcast %cst_86 : f32 to vector<4x9xf32>
    %c100_87 = arith.constant 100 : index
    %c7_88 = arith.constant 7 : index
    %100 = vector.load %arg5[%c100_87, %c7_88] : memref<132x16xf32, #tpu.memory_space<vmem>>, vector<4x9xf32>
    tpu.vector_store %arg5[%c100_87, %c7_88], %99 {strides = array<i32>} : memref<132x16xf32, #tpu.memory_space<vmem>>, vector<4x9xf32>,
    %101 = vector.extract_strided_slice %1 {offsets = [0, 10], sizes = [4, 6], strides = [1, 1]} : vector<4x16xf32> to vector<4x6xf32>
    %c104 = arith.constant 104 : index
    %c0_89 = arith.constant 0 : index
    %102 = vector.load %arg5[%c104, %c0_89] : memref<132x16xf32, #tpu.memory_space<vmem>>, vector<4x6xf32>
    tpu.vector_store %arg5[%c104, %c0_89], %101 {strides = array<i32>} : memref<132x16xf32, #tpu.memory_space<vmem>>, vector<4x6xf32>,
    %cst_90 = arith.constant 0.000000e+00 : f32
    %103 = vector.broadcast %cst_90 : f32 to vector<4x10xf32>
    %c104_91 = arith.constant 104 : index
    %c6_92 = arith.constant 6 : index
    %104 = vector.load %arg5[%c104_91, %c6_92] : memref<132x16xf32, #tpu.memory_space<vmem>>, vector<4x10xf32>
    tpu.vector_store %arg5[%c104_91, %c6_92], %103 {strides = array<i32>} : memref<132x16xf32, #tpu.memory_space<vmem>>, vector<4x10xf32>,
    %105 = vector.extract_strided_slice %1 {offsets = [0, 11], sizes = [4, 5], strides = [1, 1]} : vector<4x16xf32> to vector<4x5xf32>
    %c108 = arith.constant 108 : index
    %c0_93 = arith.constant 0 : index
    %106 = vector.load %arg5[%c108, %c0_93] : memref<132x16xf32, #tpu.memory_space<vmem>>, vector<4x5xf32>
    tpu.vector_store %arg5[%c108, %c0_93], %105 {strides = array<i32>} : memref<132x16xf32, #tpu.memory_space<vmem>>, vector<4x5xf32>,
    %cst_94 = arith.constant 0.000000e+00 : f32
    %107 = vector.broadcast %cst_94 : f32 to vector<4x11xf32>
    %c108_95 = arith.constant 108 : index
    %c5_96 = arith.constant 5 : index
    %108 = vector.load %arg5[%c108_95, %c5_96] : memref<132x16xf32, #tpu.memory_space<vmem>>, vector<4x11xf32>
    tpu.vector_store %arg5[%c108_95, %c5_96], %107 {strides = array<i32>} : memref<132x16xf32, #tpu.memory_space<vmem>>, vector<4x11xf32>,
    %109 = vector.extract_strided_slice %1 {offsets = [0, 12], sizes = [4, 4], strides = [1, 1]} : vector<4x16xf32> to vector<4x4xf32>
    %c112 = arith.constant 112 : index
    %c0_97 = arith.constant 0 : index
    %110 = vector.load %arg5[%c112, %c0_97] : memref<132x16xf32, #tpu.memory_space<vmem>>, vector<4x4xf32>
    tpu.vector_store %arg5[%c112, %c0_97], %109 {strides = array<i32>} : memref<132x16xf32, #tpu.memory_space<vmem>>, vector<4x4xf32>,
    %cst_98 = arith.constant 0.000000e+00 : f32
    %111 = vector.broadcast %cst_98 : f32 to vector<4x12xf32>
    %c112_99 = arith.constant 112 : index
    %c4_100 = arith.constant 4 : index
    %112 = vector.load %arg5[%c112_99, %c4_100] : memref<132x16xf32, #tpu.memory_space<vmem>>, vector<4x12xf32>
    tpu.vector_store %arg5[%c112_99, %c4_100], %111 {strides = array<i32>} : memref<132x16xf32, #tpu.memory_space<vmem>>, vector<4x12xf32>,
    %113 = vector.extract_strided_slice %1 {offsets = [0, 13], sizes = [4, 3], strides = [1, 1]} : vector<4x16xf32> to vector<4x3xf32>
    %c116 = arith.constant 116 : index
    %c0_101 = arith.constant 0 : index
    %114 = vector.load %arg5[%c116, %c0_101] : memref<132x16xf32, #tpu.memory_space<vmem>>, vector<4x3xf32>
    tpu.vector_store %arg5[%c116, %c0_101], %113 {strides = array<i32>} : memref<132x16xf32, #tpu.memory_space<vmem>>, vector<4x3xf32>,
    %cst_102 = arith.constant 0.000000e+00 : f32
    %115 = vector.broadcast %cst_102 : f32 to vector<4x13xf32>
    %c116_103 = arith.constant 116 : index
    %c3_104 = arith.constant 3 : index
    %116 = vector.load %arg5[%c116_103, %c3_104] : memref<132x16xf32, #tpu.memory_space<vmem>>, vector<4x13xf32>
    tpu.vector_store %arg5[%c116_103, %c3_104], %115 {strides = array<i32>} : memref<132x16xf32, #tpu.memory_space<vmem>>, vector<4x13xf32>,
    %117 = vector.extract_strided_slice %1 {offsets = [0, 14], sizes = [4, 2], strides = [1, 1]} : vector<4x16xf32> to vector<4x2xf32>
    %c120 = arith.constant 120 : index
    %c0_105 = arith.constant 0 : index
    %118 = vector.load %arg5[%c120, %c0_105] : memref<132x16xf32, #tpu.memory_space<vmem>>, vector<4x2xf32>
    tpu.vector_store %arg5[%c120, %c0_105], %117 {strides = array<i32>} : memref<132x16xf32, #tpu.memory_space<vmem>>, vector<4x2xf32>,
    %cst_106 = arith.constant 0.000000e+00 : f32
    %119 = vector.broadcast %cst_106 : f32 to vector<4x14xf32>
    %c120_107 = arith.constant 120 : index
    %c2_108 = arith.constant 2 : index
    %120 = vector.load %arg5[%c120_107, %c2_108] : memref<132x16xf32, #tpu.memory_space<vmem>>, vector<4x14xf32>
    tpu.vector_store %arg5[%c120_107, %c2_108], %119 {strides = array<i32>} : memref<132x16xf32, #tpu.memory_space<vmem>>, vector<4x14xf32>,
    %121 = vector.extract_strided_slice %1 {offsets = [0, 15], sizes = [4, 1], strides = [1, 1]} : vector<4x16xf32> to vector<4x1xf32>
    %c124 = arith.constant 124 : index
    %c0_109 = arith.constant 0 : index
    %122 = vector.load %arg5[%c124, %c0_109] : memref<132x16xf32, #tpu.memory_space<vmem>>, vector<4x1xf32>
    tpu.vector_store %arg5[%c124, %c0_109], %121 {strides = array<i32>} : memref<132x16xf32, #tpu.memory_space<vmem>>, vector<4x1xf32>,
    %cst_110 = arith.constant 0.000000e+00 : f32
    %123 = vector.broadcast %cst_110 : f32 to vector<4x15xf32>
    %c124_111 = arith.constant 124 : index
    %c1_112 = arith.constant 1 : index
    %124 = vector.load %arg5[%c124_111, %c1_112] : memref<132x16xf32, #tpu.memory_space<vmem>>, vector<4x15xf32>
    tpu.vector_store %arg5[%c124_111, %c1_112], %123 {strides = array<i32>} : memref<132x16xf32, #tpu.memory_space<vmem>>, vector<4x15xf32>,
    %cst_113 = arith.constant 0.000000e+00 : f32
    %125 = vector.broadcast %cst_113 : f32 to vector<4x16xf32>
    %c128 = arith.constant 128 : index
    %c0_114 = arith.constant 0 : index
    %126 = vector.load %arg5[%c128, %c0_114] : memref<132x16xf32, #tpu.memory_space<vmem>>, vector<4x16xf32>
    tpu.vector_store %arg5[%c128, %c0_114], %125 {strides = array<i32>} : memref<132x16xf32, #tpu.memory_space<vmem>>, vector<4x16xf32>,
    %c0_115 = arith.constant 0 : index
    %c0_116 = arith.constant 0 : index
    %127 = vector.load %arg5[%c0_115, %c0_116] : memref<132x16xf32, #tpu.memory_space<vmem>>, vector<132x16xf32>
    %c0_117 = arith.constant 0 : index
    %c0_118 = arith.constant 0 : index
    %128 = vector.load %arg2[%c0_117, %c0_118] : memref<132x256xf32, #tpu.memory_space<vmem>>, vector<132x256xf32>
    %cst_119 = arith.constant dense<0.000000e+00> : vector<16x256xf32>
    %129 = tpu.matmul %127, %128, %cst_119 {dimension_numbers = #tpu.dot_dimension_numbers<[0], [0], [1], [1], [0, 1, 1, 1], [], []>} : vector<132x16xf32>, vector<132x256xf32>, vector<16x256xf32> -> vector<16x256xf32>
    %c0_120 = arith.constant 0 : index
    %c0_121 = arith.constant 0 : index
    %130 = vector.load %arg3[%c0_120, %c0_121] : memref<1x256xf32, #tpu.memory_space<vmem>>, vector<1x256xf32>
    %131 = vector.shape_cast %130 : vector<1x256xf32> to vector<256xf32>
    %132 = vector.shape_cast %131 : vector<256xf32> to vector<1x256xf32>
    %133 = vector.broadcast %132 : vector<1x256xf32> to vector<16x256xf32>
    %134 = arith.addf %129, %133 : vector<16x256xf32>
    %cst_122 = arith.constant 0.000000e+00 : f32
    %135 = vector.broadcast %cst_122 : f32 to vector<16x256xf32>
    %136 = arith.maximumf %134, %135 : vector<16x256xf32>
    %137 = vector.shape_cast %136 : vector<16x256xf32> to vector<8x2x256xf32>
    %cst_123 = arith.constant dense<0xFF800000> : vector<8x256xf32>
    %138 = vector.multi_reduction <maximumf>, %137, %cst_123 [1] : vector<8x2x256xf32> to vector<8x256xf32>
    %139 = vector.extract_strided_slice %138 {offsets = [0, 0], sizes = [8, 128], strides = [1, 1]} : vector<8x256xf32> to vector<8x128xf32>
    %140 = vector.extract_strided_slice %138 {offsets = [0, 128], sizes = [8, 128], strides = [1, 1]} : vector<8x256xf32> to vector<8x128xf32>
    %141 = arith.addf %139, %140 : vector<8x128xf32>
    %142 = tpu.transpose %141, [1, 0] : vector<8x128xf32> -> vector<128x8xf32>
    %143 = vector.extract_strided_slice %142 {offsets = [0, 0], sizes = [8, 8], strides = [1, 1]} : vector<128x8xf32> to vector<8x8xf32>
    %c0_124 = arith.constant 0 : index
    %c0_125 = arith.constant 0 : index
    %c0_126 = arith.constant 0 : index
    %144 = vector.load %arg4[%c0_124, %c0_125, %c0_126] : memref<1x8x8xf32, #tpu.memory_space<vmem>>, vector<1x8x8xf32>
    %145 = vector.shape_cast %144 : vector<1x8x8xf32> to vector<8x8xf32>
    %146 = vector.shape_cast %143 : vector<8x8xf32> to vector<1x8x8xf32>
    tpu.vector_store %arg4[%c0_124, %c0_125, %c0_126], %146 {strides = array<i32>} : memref<1x8x8xf32, #tpu.memory_space<vmem>>, vector<1x8x8xf32>,
    return
  }
  func.func @transform_0(%arg0: i32) -> (i32, i32, i32) {
    %c0_i32 = arith.constant 0 : i32
    %c0_i32_0 = arith.constant 0 : i32
    %c0_i32_1 = arith.constant 0 : i32
    return %arg0, %c0_i32, %c0_i32_0 : i32, i32, i32
  }
  func.func @transform_1(%arg0: i32) -> (i32, i32) {
    %c0_i32 = arith.constant 0 : i32
    %c0_i32_0 = arith.constant 0 : i32
    %c0_i32_1 = arith.constant 0 : i32
    return %c0_i32, %c0_i32_0 : i32, i32
  }
  func.func @transform_2(%arg0: i32) -> (i32, i32) {
    %c0_i32 = arith.constant 0 : i32
    %c0_i32_0 = arith.constant 0 : i32
    %c0_i32_1 = arith.constant 0 : i32
    return %c0_i32, %c0_i32_0 : i32, i32
  }
  func.func @transform_3(%arg0: i32) -> (i32, i32, i32) {
    %c0_i32 = arith.constant 0 : i32
    %c0_i32_0 = arith.constant 0 : i32
    %c0_i32_1 = arith.constant 0 : i32
    return %arg0, %c0_i32, %c0_i32_0 : i32, i32, i32
  }
}

</mosaic_0001>

<bundles_post_ra>
// kernel: tpu_custom_call.1
= control target key start
LH: loop header
LB: loop body
LE: loop exit
PB: predicated region body
PF: predicated region fallthrough
CT: control target
= control target key end

     0   :  { %8 = vsyncpa [#allocation4], 0  ;;  %s1623_s0 = inlined_call_operand.hbm [shape: f32[2,4,16], index: 0, kind: input, shape index: {}]   ;;  %s1624_s1 = inlined_call_operand.hbm [shape: f32[132,256], index: 1, kind: input, shape index: {}]   ;;  %s1625_s2 = inlined_call_operand.hbm [shape: f32[1,256], index: 2, kind: input, shape index: {}]   ;;  %s1626_s3 = inlined_call_operand.hbm [shape: f32[2,8,8], index: 3, kind: output, shape index: {}]  }
   0x1   :  { %10 = vsyncpa [#allocation4 + $0x1], 0 }
   0x2   :  { %11 = vsyncpa [#allocation7], 0 }
   0x3   :  { %12 = vsyncpa [#allocation5], 0 }
   0x4   :  { %14 = vsyncpa [#allocation5 + $0x1], 0  ;;  %s1325_s12 = smov 0   ;;  %s1327_s13 = smov 0  }
   0x5   :  { %s1329_s14 = smov 0   ;;  %s1331_s15 = smov 0  }
   0x6 LB: > { %s130_s18 = sshll.u32 %s1624_s1, 4  ;;  %s1349_s19 = sadd.s32 4294967295, %s1268_s15   ;;  %s1268_s15 = sphi %s1331_s15, %s1665_s15   ;;  %s1264_s14 = sphi %s1329_s14, %s1664_s14   ;;  %s1260_s13 = sphi %s1327_s13, %s1663_s13   ;;  %s1256_s12 = sphi %s1325_s12, %s1662_s12   ;;  %s131_s18 = int_to_ptr.hbm [resolvable:$true] %s130_s18 }
   0x7   : > { %p984_p0 = scmp.ge.s32.totalorder %s1268_s15, 1  ;;  %p41_p1 = scmp.eq.s32.totalorder %s1349_s19, 0 }
   0x8   : > { %p119_p2 = scmp.lt.s32.totalorder %s1268_s15, 3  ;;  %s1270_s21 = smov [#allocation6]  }
   0x9   : > { %s132_s22 = sshll.u32 %s1270_s21, 4  ;;  %s145_s25 = sshll.u32 %s1625_s2, 4  ;;  %s133_s22 = int_to_ptr.vmem [resolvable:$true] %s132_s22  ;;  %s146_s25 = int_to_ptr.hbm [resolvable:$true] %s145_s25 }
   0xa   : > { %p1354_p3 = pnand %p984_p0, %p119_p2  ;;  %s1271_s26 = smov [#allocation8]  }
   0xb   : > { %s147_s27 = sshll.u32 %s1271_s26, 4  ;;  %s1272_s28 = smov 256   ;;  %s148_s27 = int_to_ptr.vmem [resolvable:$true] %s147_s27 }
   0xc   : > { %p1020_p4 = pneg %p1354_p3  ;;  %s1273_s29 = smov 16  }
   0xd   : > { %s983_s30 = sadd.s32 4294967294, %s1268_s15   ;;  %s1368_s4 = sadd.s32 1, %s1268_s15  }
   0xe   : > { %p1021_p6 = pnand %p1020_p4, %p41_p1  ;;  %s24_s5 = ssub.s32 %s1268_s15, %s1368_s4 }
   0xf   : > { %s27_s6 = sadd.s32 1, %s1264_s14  ;;  %p25_p7 = scmp.eq.s32.totalorder %s24_s5, 0 }
  0x10   : > { %1023 = dma.hbm_to_vmem [thread:$0]  (!%p1021_p6), %s131_s18, 4352, %s133_s22, [#allocation7], %s1272_s28, %s1272_s28, %s1273_s29  }
  0x11   : > { %1026 = dma.hbm_to_vmem [thread:$0]  (!%p1021_p6), %s146_s25, 32, %s148_s27, [#allocation7]  }
  0x12   : > { %p34_p8 = scmp.ne.s32.totalorder %s1264_s14, %s1260_s13  ;;  %p35_p9 = scmp.eq.s32.totalorder %s1268_s15, 0 }
  0x13   : > { %p40_p10 = scmp.ne.s32.totalorder %s1260_s13, %s1256_s12  ;;  %p106_p13 = scmp.eq.s32.totalorder %s1349_s19, 1 }
  0x14   : > { %s1379_s7 = scalar_select %p25_p7, %s1264_s14, %s27_s6  }
  0x15   : > { %p1381_p11 = por %p35_p9, %p34_p8  ;;  %p1387_p12 = por %p41_p1, %p40_p10 }
  0x16   : > { %p112_p0 = scmp.eq.s32.totalorder %s983_s30, 1  ;;  %p1037_p2 = scmp.lt.s32.totalorder %s1268_s15, 2 }
  0x17   : > { %s158_s10 = sand.u32 1, %s1264_s14   ;;  %p1394_p4 = por %p106_p13, %p34_p8 }
  0x18   : > { %p1398_p6 = por %p112_p0, %p40_p10  ;;  %s988_s17 = sshll.u32 %s158_s10, 2 }
  0x19   : > { %s989_s18 = sshll.u32 %s1268_s15, 2  ;;  %s162_s24 = scalar_lea.vmem [#allocation3], %s988_s17 }
  0x1a   : > { %s166_s23 = scalar_lea.hbm %s1623_s0, %s989_s18  ;;  %s170_s25 = sshll.u32 %s162_s24, 4  ;;  %s171_s25 = int_to_ptr.vmem [resolvable:$true] %s170_s25 }
  0x1b   : > { %s168_s26 = sshll.u32 %s166_s23, 4  ;;  %p1408_p7 = pnand %p1037_p2, %p1381_p11  ;;  %s169_s26 = int_to_ptr.hbm [resolvable:$true] %s168_s26 }
  0x1c   : > { %s159_s28 = scalar_lea.sflag [#allocation4], %s158_s10  ;;  %s1168_s29 = sshra.s32 %s169_s26, 4  ;;  %s1169_s29 = int_to_ptr.hbm [resolvable:$true] %s1168_s29 }
  0x1d   : > { %s1170_s30 = scalar_lea.hbm %s1169_s29, 4  ;;  %p1172_p9 = pneg %p1408_p7 }
  0x1e   : > { %p1171_p8 = scmp.ne.s32.totalorder %s1169_s29, %s1170_s30  ;;  %s1175_s17 = scalar_lea.hbm %s1623_s0, 8 }
  0x1f   : > { %p1176_p11 = scmp.lt.s32.totalorder %s1169_s29, %s1623_s0  ;;  %p1177_p0 = scmp.lt.s32.totalorder %s1175_s17, %s1170_s30 }
  0x20   : > { %p1173_p10 = pnand %p1172_p9, %p1171_p8 }
  0x21   : > { %p1178_p2 = por %p1177_p0, %p1176_p11 }
  0x22   : > { %p1174_p13 = pneg %p1173_p10 }
  0x24   : > { %p1179_p5 = pnand %p1178_p2, %p1174_p13 }
  0x26   : > { %1182 = shalt.err (!%p1179_p5)
}
  0x27   : > { %1030 = dma.hbm_to_vmem [thread:$0]  (!%p1408_p7), %s169_s26, 64, %s171_s25, %s159_s28  }
  0x28   : > { %179 = sbr.rel (%p1354_p3) target bundleno = 687 (0x2af), region = 32  ;;  %s1425_s10 = sand.u32 (!%p1354_p3), 1, %s1260_s13  }
  0x29   : > { %s991_s21 = sshll.u32 (!%p1354_p3), %s1425_s10, 2  ;;  %s182_s22 = scalar_lea.sflag (!%p1354_p3), [#allocation4], %s1425_s10 }
  0x2a   : > { %s185_s23 = scalar_lea.vmem (!%p1354_p3), [#allocation3], %s991_s21 }
  0x2d   : > { %1243 = dma.done.wait (%p1387_p12), %s182_s22, 64  }
  0x2e   : > { %1245 = vsyncadd (%p1387_p12), %s182_s22, 4294967232 }
  0x2f   : > { %1247 = dma.done.wait (%p41_p1), [#allocation7], 4384  }
  0x30   : > { %1249 = vsyncadd (%p41_p1), [#allocation7], 4294962912  ;;  %v1437_v0 = vld [vmem:[%s185_s23] sm:$0xf]  ;;  %s1274_s20 = smov 13   ;;  %s1275_s24 = smov 15  }
  0x31   : > { %239 = vrot.lane.b32.xlu1 %v1437_v0, %s1274_s20  ;;  %225 = vrot.lane.b32.xlu0 %v1437_v0, %s1275_s24  ;;  %s1276_s25 = smov 11   ;;  %s1277_s26 = smov 12   ;;  %vm251_vm0 = vcmask 84992   ;;  %v1292_v1 = vmov 0.0   ;;  %vm237_vm1 = vcmask 101376   ;;  %vm222_vm2 = vcmask 117760  }
  0x32   : > { %253 = vrot.lane.b32.xlu2 %v1437_v0, %s1276_s25  ;;  %s1278_s9 = smov 14   ;;  %s1279_s27 = smov 10   ;;  %252 = vst.msk [vmem:[#allocation2 + $0x14] sm:$0xf] %vm251_vm0, %v1292_v1  ;;  %vm220_vm3 = vcmask 125952   ;;  %vm1638_vm4 = vcmask 76800  }
  0x33   : > { %s1280_s28 = smov 8   ;;  %s1281_s29 = smov 9   ;;  %238 = vst.msk [vmem:[#allocation2 + $0xc] sm:$0xf] %vm237_vm1, %v1292_v1  ;;  %vm244_vm5 = vcmask 93184   ;;  %vm256_vm6 = vcmask 126040  }
  0x34   : > { %s1282_s30 = smov 7   ;;  %s1283_s5 = smov 5   ;;  %223 = vst.msk [vmem:[#allocation2 + $0x4] sm:$0xf] %vm222_vm2, %v1292_v1  ;;  %vm230_vm7 = vcmask 109568   ;;  %vm1627_vm8 = vcmask 52224  }
  0x35   : > { %s1284_s6 = smov 6   ;;  %s1285_s17 = smov 4   ;;  %221 = vst.msk [vmem:[#allocation2] sm:$0xf] %vm220_vm3, %v1292_v1  ;;  %vm1635_vm9 = vcmask 60416   ;;  %vm1637_vm10 = vcmask 126032  }
  0x36   : > { %s1286_s18 = smov 2   ;;  %s1287_s8 = smov 3   ;;  %259 = vst.msk [vmem:[#allocation2 + $0x18] sm:$0xf] %vm1638_vm4, %v1292_v1  ;;  %vm1629_vm11 = vcmask 68608   ;;  %vm1628_vm12 = vcmask 27648  }
  0x37   : > { %s1288_s21 = smov 1   ;;  %s1289_s22 = smov 126   ;;  %245 = vst.msk [vmem:[#allocation2 + $0x10] sm:$0xf] %vm244_vm5, %v1292_v1  ;;  %vm1630_vm13 = vcmask 35840   ;;  %vm1632_vm14 = vcmask 126008  }
  0x38   : > { %s1290_s23 = smov 127   ;;  %s1291_s20 = smov 125   ;;  %328 = vst.msk [vmem:[#allocation2 + $0x40] sm:$0xf] %vm220_vm3, %v1437_v0  ;;  %vm1631_vm15 = vcmask 44032   ;;  %vm291_vm4 = vcmask 126000  }
  0x39   : > { %246 = vrot.lane.b32.xlu1 %v1437_v0, %s1277_s26  ;;  %232 = vrot.lane.b32.xlu0 %v1437_v0, %s1278_s9  ;;  %s1293_s24 = smov 123   ;;  %s1294_s25 = smov 124   ;;  %404 = vst.msk [vmem:[#allocation2 + $0x80] sm:$0xf] %vm220_vm3, %v1292_v1  ;;  %vm1633_vm3 = vcmask 3072   ;;  %v452_v45 = vld [vmem:[#allocation6 + $0xf0] sm:$0xff] }
  0x3a   : > { %260 = vrot.lane.b32.xlu2 %v1437_v0, %s1279_s27  ;;  %s1295_s26 = smov 122   ;;  %s1296_s9 = smov 120   ;;  %231 = vst.msk [vmem:[#allocation2 + $0x8] sm:$0xf] %vm230_vm7, %v1292_v1  ;;  %v453_v46 = vld [vmem:[#allocation6 + $0xf8] sm:$0xff]  ;;  %v450_v47 = vld [vmem:[#allocation6 + $0xe0] sm:$0xff]  ;;  %540 = vmatpush.msra.mxu0 %v452_v45 }
  0x3b   : > { %s1297_s27 = smov 121   ;;  %280 = vst.msk [vmem:[#allocation2 + $0x24] sm:$0xf] %vm1627_vm8, %v1292_v1  ;;  %vm1634_vm8 = vcmask 11264   ;;  %586 = vmatpush.msra.mxu2 %v453_v46  ;;  %v451_v48 = vld [vmem:[#allocation6 + $0xe8] sm:$0xff]  ;;  %v448_v49 = vld [vmem:[#allocation6 + $0xd0] sm:$0xff] }
  0x3c   : > { %273 = vst.msk [vmem:[#allocation2 + $0x20] sm:$0xf] %vm1635_vm9, %v1292_v1  ;;  %vm270_vm9 = vcmask 126024   ;;  %v449_v50 = vld [vmem:[#allocation6 + $0xd8] sm:$0xff]  ;;  %541 = vmatpush.msra.mxu0 %v450_v47  ;;  %v446_v51 = vld [vmem:[#allocation6 + $0xc0] sm:$0xff]  ;;  %v447_v52 = vld [vmem:[#allocation6 + $0xc8] sm:$0xff] }
  0x3d   : > { %266 = vst.msk [vmem:[#allocation2 + $0x1c] sm:$0xf] %vm1629_vm11, %v1292_v1  ;;  %vm228_vm11 = vcmask 126072   ;;  %587 = vmatpush.msra.mxu2 %v451_v48  ;;  %v444_v54 = vld [vmem:[#allocation6 + $0xb0] sm:$0xff]  ;;  %v445_v55 = vld [vmem:[#allocation6 + $0xb8] sm:$0xff]  ;;  %v442_v56 = vld [vmem:[#allocation6 + $0xa0] sm:$0xff] }
  0x3e   : > { %301 = vst.msk [vmem:[#allocation2 + $0x30] sm:$0xf] %vm1628_vm12, %v1292_v1  ;;  %vm242_vm12 = vcmask 126056   ;;  %542 = vmatpush.msra.mxu0 %v448_v49  ;;  %v443_v57 = vld [vmem:[#allocation6 + $0xa8] sm:$0xff]  ;;  %v440_v58 = vld [vmem:[#allocation6 + $0x90] sm:$0xff]  ;;  %v441_v59 = vld [vmem:[#allocation6 + $0x98] sm:$0xff] }
  0x3f   : > { %294 = vst.msk [vmem:[#allocation2 + $0x2c] sm:$0xf] %vm1630_vm13, %v1292_v1  ;;  %vm1636_vm13 = vcmask 125984   ;;  %588 = vmatpush.msra.mxu2 %v449_v50  ;;  %v438_v60 = vld [vmem:[#allocation6 + $0x80] sm:$0xff]  ;;  %v439_v61 = vld [vmem:[#allocation6 + $0x88] sm:$0xff]  ;;  %v436_v63 = vld [vmem:[#allocation6 + $0x70] sm:$0xff] }
  0x40   : > { %287 = vst.msk [vmem:[#allocation2 + $0x28] sm:$0xf] %vm1631_vm15, %v1292_v1  ;;  %vm249_vm15 = vcmask 126048   ;;  %v421_v10 = vld [vmem:[#allocation2 + $0x80] sm:$0xf]  ;;  %543 = vmatpush.msra.mxu0 %v446_v51 }
  0x41   : > { %274 = vrot.lane.b32.xlu1 %v1437_v0, %s1280_s28  ;;  %267 = vrot.lane.b32.xlu0 %v1437_v0, %s1281_s29  ;;  %s1298_s28 = smov 119   ;;  %s1299_s29 = smov 117   ;;  %322 = vst.msk [vmem:[#allocation2 + $0x3c] sm:$0xf] %vm1633_vm3, %v1292_v1  ;;  %vm1639_vm3 = vcmask 125960  }
  0x42   : > { %281 = vrot.lane.b32.xlu2 %v1437_v0, %s1282_s30  ;;  %s1300_s30 = smov 118   ;;  %315 = vst.msk [vmem:[#allocation2 + $0x38] sm:$0xf] %vm1634_vm8, %v1292_v1  ;;  %vm1640_vm8 = vcmask 126016   ;;  %589 = vmatpush.msra.mxu2 %v447_v52 }
  0x43   : > { %544 = vmatpush.msra.mxu0 %v444_v54 }
  0x44   : > { %590 = vmatpush.msra.mxu2 %v445_v55 }
  0x45   : > { %545 = vmatpush.msra.mxu0 %v442_v56 }
  0x46   : > { %591 = vmatpush.msra.mxu2 %v443_v57 }
  0x47   : > { %546 = vmatpush.msra.mxu0 %v440_v58 }
  0x48   : > { %592 = vmatpush.msra.mxu2 %v441_v59 }
  0x49   : > { %295 = vrot.lane.b32.xlu1 %v1437_v0, %s1283_s5  ;;  %288 = vrot.lane.b32.xlu0 %v1437_v0, %s1284_s6  ;;  %s1301_s5 = smov 116   ;;  %s1302_s6 = smov 114  }
  0x4a   : > { %302 = vrot.lane.b32.xlu2 %v1437_v0, %s1285_s17  ;;  %s1303_s17 = smov 115   ;;  %547 = vmatpush.msra.mxu0 %v438_v60 }
  0x4b   : > { %593 = vmatpush.msra.mxu2 %v439_v61 }
  0x4c   : > { %548 = vmatpush.msra.mxu0 %v436_v63 }
  0x51   : > { %316 = vrot.lane.b32.xlu1 %v1437_v0, %s1286_s18  ;;  %309 = vrot.lane.b32.xlu0 %v1437_v0, %s1287_s8  ;;  %s1304_s18 = smov 113   ;;  %s994_s8 = sshll.u32 %s1425_s10, 3 }
  0x52   : > { %323 = vrot.lane.b32.xlu2 %v1437_v0, %s1288_s21  ;;  %s1002_s21 = sshll.u32 %s1349_s19, 3 }
  0x59   : > { %334 = vrot.lane.b32.xlu1 %v1437_v0, %s1289_s22  ;;  %329 = vrot.lane.b32.xlu0 %v1437_v0, %s1290_s23 }
  0x5a   : > { %339 = vrot.lane.b32.xlu2 %v1437_v0, %s1291_s20  ;;  %s889_s20 = scalar_lea.hbm %s1626_s3, %s1002_s21 }
  0x61   : > { %349 = vrot.lane.b32.xlu1 %v1437_v0, %s1293_s24  ;;  %344 = vrot.lane.b32.xlu0 %v1437_v0, %s1294_s25  ;;  %s218_s24 = scalar_lea.vmem [#allocation9], %s994_s8 }
  0x62   : > { %354 = vrot.lane.b32.xlu2 %v1437_v0, %s1295_s26  ;;  %s891_s25 = sshll.u32 %s218_s24, 4  ;;  %s893_s26 = sshll.u32 %s889_s20, 4  ;;  %s892_s25 = int_to_ptr.vmem [resolvable:$true] %s891_s25  ;;  %s894_s26 = int_to_ptr.hbm [resolvable:$true] %s893_s26 }
  0x69   : > { %364 = vrot.lane.b32.xlu1 %v1437_v0, %s1296_s9  ;;  %359 = vrot.lane.b32.xlu0 %v1437_v0, %s1297_s27  ;;  %s879_s9 = scalar_lea.sflag [#allocation5], %s1425_s10  ;;  %s1212_s27 = sshra.s32 %s894_s26, 4  ;;  %s1213_s27 = int_to_ptr.hbm [resolvable:$true] %s1212_s27 }
  0x6a   : > { %369 = vrot.lane.b32.xlu2 %v1437_v0, %s1298_s28  ;;  %s1214_s28 = scalar_lea.hbm %s1213_s27, 8  ;;  %p1219_p12 = scmp.lt.s32.totalorder %s1213_s27, %s1626_s3 }
  0x6b   : > { %p1215_p1 = scmp.ne.s32.totalorder %s1213_s27, %s1214_s28 }
  0x6d   : > { %p1216_p3 = pnand %p1215_p1, %p1394_p4 }
  0x6f   : > { %p1217_p5 = pneg %p1216_p3 }
  0x71   : > { %379 = vrot.lane.b32.xlu1 %v1437_v0, %s1299_s29  ;;  %374 = vrot.lane.b32.xlu0 %v1437_v0, %s1300_s30  ;;  %s1218_s30 = scalar_lea.hbm %s1626_s3, 16 }
  0x72   : > { %384 = vrot.lane.b32.xlu2 %v1437_v0, %s1301_s5  ;;  %p1220_p7 = scmp.lt.s32.totalorder %s1218_s30, %s1214_s28 }
  0x74   : > { %p1221_p8 = por %p1220_p7, %p1219_p12 }
  0x76   : > { %p1222_p9 = pnand %p1221_p8, %p1217_p5 }
  0x79   : > { %394 = vrot.lane.b32.xlu1 %v1437_v0, %s1302_s6  ;;  %389 = vrot.lane.b32.xlu0 %v1437_v0, %s1303_s17 }
  0x7a   : > { %399 = vrot.lane.b32.xlu2 %v1437_v0, %s1304_s18  ;;  %v437_v0 = vld [vmem:[#allocation6 + $0x78] sm:$0xff] }
  0x7b   : > { %594 = vmatpush.msra.mxu2 %v437_v0 }
  0x8c   : > { %v254_v2 = vpop.permute.xlu2 %253 }
  0x8d   : > { %257 = vst.msk [vmem:[#allocation2 + $0x14] sm:$0xf] %vm256_vm6, %v254_v2  ;;  %v435_v2 = vld [vmem:[#allocation6 + $0x68] sm:$0xff] }
  0x8e   : > { %595 = vmatpush.msra.mxu2 %v435_v2 }
  0x94   : > { %v261_v3 = vpop.permute.xlu2 %260 }
  0x95   : > { %264 = vst.msk [vmem:[#allocation2 + $0x18] sm:$0xf] %vm1637_vm10, %v261_v3  ;;  %vm298_vm10 = vcmask 125992   ;;  %v432_v3 = vld [vmem:[#allocation6 + $0x50] sm:$0xff] }
  0x9c   : > { %v282_v4 = vpop.permute.xlu2 %281 }
  0x9d   : > { %285 = vst.msk [vmem:[#allocation2 + $0x24] sm:$0xf] %vm1632_vm14, %v282_v4  ;;  %vm235_vm14 = vcmask 126064   ;;  %v433_v4 = vld [vmem:[#allocation6 + $0x58] sm:$0xff] }
  0x9e   : > { %596 = vmatpush.msra.mxu2 %v433_v4 }
  0xa3   : > { %v240_v5 = vpop.permute.xlu1 %239  ;;  %v226_v6 = vpop.permute.xlu0 %225 }
  0xa4   : > { %243 = vst.msk [vmem:[#allocation2 + $0xc] sm:$0xf] %vm242_vm12, %v240_v5  ;;  %v303_v7 = vpop.permute.xlu2 %302  ;;  %v430_v5 = vld [vmem:[#allocation6 + $0x40] sm:$0xff] }
  0xa5   : > { %229 = vst.msk [vmem:[#allocation2 + $0x4] sm:$0xf] %vm228_vm11, %v226_v6  ;;  %v431_v6 = vld [vmem:[#allocation6 + $0x48] sm:$0xff] }
  0xa6   : > { %306 = vst.msk [vmem:[#allocation2 + $0x30] sm:$0xf] %vm1636_vm13, %v303_v7  ;;  %vm307_vm13 = vcmask 19456   ;;  %597 = vmatpush.msra.mxu2 %v431_v6 }
  0xa7   : > { %308 = vst.msk [vmem:[#allocation2 + $0x34] sm:$0xf] %vm307_vm13, %v1292_v1 }
  0xab   : > { %v247_v8 = vpop.permute.xlu1 %246  ;;  %v233_v9 = vpop.permute.xlu0 %232 }
  0xac   : > { %250 = vst.msk [vmem:[#allocation2 + $0x10] sm:$0xf] %vm249_vm15, %v247_v8  ;;  %v405_v11 = vld [vmem:[#allocation2] sm:$0xff]  ;;  %v324_v12 = vpop.permute.xlu2 %323 }
  0xad   : > { %236 = vst.msk [vmem:[#allocation2 + $0x8] sm:$0xf] %vm235_vm14, %v233_v9  ;;  %462 = vxpose.xlu0.b32.start [1/16] (narrow) %v405_v11, 16  ;;  %v428_v8 = vld [vmem:[#allocation6 + $0x30] sm:$0xff]  ;;  %v429_v9 = vld [vmem:[#allocation6 + $0x38] sm:$0xff]  ;;  %v427_v11 = vld [vmem:[#allocation6 + $0x28] sm:$0xff] }
  0xae   : > { %494 = vxpose.xlu1.b32.start.end [1/1] (short) (narrow) %v421_v10, 16  ;;  %327 = vst.msk [vmem:[#allocation2 + $0x3c] sm:$0xf] %vm1639_vm3, %v324_v12  ;;  %vm319_vm3 = vcmask 125968   ;;  %v426_v10 = vld [vmem:[#allocation6 + $0x20] sm:$0xff]  ;;  %598 = vmatpush.msra.mxu2 %v429_v9  ;;  %v424_v12 = vld [vmem:[#allocation6 + $0x10] sm:$0xff] }
  0xb0   : > { %599 = vmatpush.msra.mxu2 %v427_v11 }
  0xb3   : > { %v275_v13 = vpop.permute.xlu1 %274  ;;  %v268_v14 = vpop.permute.xlu0 %267  ;;  %v407_v18 = vld [vmem:[#allocation2 + $0x10] sm:$0xff] }
  0xb4   : > { %278 = vst.msk [vmem:[#allocation2 + $0x20] sm:$0xf] %vm1640_vm8, %v275_v13  ;;  %v406_v15 = vld [vmem:[#allocation2 + $0x8] sm:$0xff]  ;;  %vm312_vm8 = vcmask 125976   ;;  %v340_v22 = vpop.permute.xlu2 %339 }
  0xb5   : > { %271 = vst.msk [vmem:[#allocation2 + $0x1c] sm:$0xf] %vm270_vm9, %v268_v14  ;;  %463 = vxpose.xlu0.b32.cont [2/16] (narrow) %v406_v15, 16  ;;  %v425_v13 = vld [vmem:[#allocation6 + $0x18] sm:$0xff]  ;;  %v422_v14 = vld [vmem:[#allocation6] sm:$0xff]  ;;  %v423_v15 = vld [vmem:[#allocation6 + $0x8] sm:$0xff] }
  0xb6   : > { %342 = vst.msk [vmem:[#allocation2 + $0x4c] sm:$0xf] %vm237_vm1, %v340_v22  ;;  %vm1647_vm1 = vcmask 76800   ;;  %600 = vmatpush.msra.mxu2 %v425_v13 }
  0xb7   : > { %343 = vst.msk [vmem:[#allocation2 + $0x4c] sm:$0xf] %vm242_vm12, %v1292_v1  ;;  %vm1654_vm12 = vcmask 35840  }
  0xb8   : > { %601 = vmatpush.msra.mxu2 %v423_v15 }
  0xbb   : > { %v296_v16 = vpop.permute.xlu1 %295  ;;  %v289_v17 = vpop.permute.xlu0 %288  ;;  %v409_v25 = vld [vmem:[#allocation2 + $0x20] sm:$0xff] }
  0xbc   : > { %299 = vst.msk [vmem:[#allocation2 + $0x2c] sm:$0xf] %vm298_vm10, %v296_v16  ;;  %v408_v19 = vld [vmem:[#allocation2 + $0x18] sm:$0xff]  ;;  %v355_v29 = vpop.permute.xlu2 %354 }
  0xbd   : > { %292 = vst.msk [vmem:[#allocation2 + $0x28] sm:$0xf] %vm291_vm4, %v289_v17  ;;  %464 = vxpose.xlu0.b32.cont [3/16] (narrow) %v407_v18, 16  ;;  %v454_v17 = vld [vmem:[#allocation6 + $0x100] sm:$0xf] }
  0xbe   : > { %357 = vst.msk [vmem:[#allocation2 + $0x58] sm:$0xf] %vm1647_vm1, %v355_v29  ;;  %vm1660_vm1 = vcmask 125960   ;;  %v455_v18 = vld [vmem:[#allocation6 + $0x108] sm:$0xf] }
  0xc3   : > { %v317_v20 = vpop.permute.xlu1 %316  ;;  %v310_v21 = vpop.permute.xlu0 %309 }
  0xc4   : > { %320 = vst.msk [vmem:[#allocation2 + $0x38] sm:$0xf] %vm319_vm3, %v317_v20  ;;  %v410_v28 = vld [vmem:[#allocation2 + $0x28] sm:$0xff]  ;;  %v370_v33 = vpop.permute.xlu2 %369 }
  0xc5   : > { %465 = vxpose.xlu0.b32.cont [4/16] (narrow) %v408_v19, 16  ;;  %313 = vst.msk [vmem:[#allocation2 + $0x34] sm:$0xf] %vm312_vm8, %v310_v21 }
  0xcb   : > { %v335_v23 = vpop.permute.xlu1 %334  ;;  %v330_v24 = vpop.permute.xlu0 %329  ;;  %v412_v36 = vld [vmem:[#allocation2 + $0x38] sm:$0xff] }
  0xcc   : > { %337 = vst.msk [vmem:[#allocation2 + $0x48] sm:$0xf] %vm230_vm7, %v335_v23  ;;  %v411_v30 = vld [vmem:[#allocation2 + $0x30] sm:$0xff]  ;;  %vm1650_vm7 = vcmask 126016   ;;  %v385_v40 = vpop.permute.xlu2 %384  ;;  %v456_v23 = vld [vmem:[#allocation8] sm:$0x3] }
  0xcd   : > { %338 = vst.msk [vmem:[#allocation2 + $0x48] sm:$0xf] %vm235_vm14, %v1292_v1  ;;  %466 = vxpose.xlu0.b32.cont [5/16] (narrow) %v409_v25, 16  ;;  %vm1655_vm14 = vcmask 44032  }
  0xce   : > { %332 = vst.msk [vmem:[#allocation2 + $0x44] sm:$0xf] %vm222_vm2, %v330_v24  ;;  %vm1648_vm2 = vcmask 126032   ;;  %v458_v24 = vperm.slane %v456_v23, 0 }
  0xcf   : > { %333 = vst.msk [vmem:[#allocation2 + $0x44] sm:$0xf] %vm228_vm11, %v1292_v1  ;;  %vm1653_vm11 = vcmask 126008  }
  0xd0   : > { %358 = vst.msk [vmem:[#allocation2 + $0x58] sm:$0xf] %vm1648_vm2, %v1292_v1  ;;  %vm644_vm2 = vcmask 1043458  }
  0xd3   : > { %v350_v26 = vpop.permute.xlu1 %349  ;;  %v345_v27 = vpop.permute.xlu0 %344 }
  0xd4   : > { %352 = vst.msk [vmem:[#allocation2 + $0x54] sm:$0xf] %vm251_vm0, %v350_v26  ;;  %vm1649_vm0 = vcmask 60416   ;;  %v414_v41 = vld [vmem:[#allocation2 + $0x48] sm:$0xff]  ;;  %v400_v42 = vpop.permute.xlu2 %399  ;;  %v459_v26 = vperm.slane %v456_v23, 1 }
  0xd5   : > { %353 = vst.msk [vmem:[#allocation2 + $0x54] sm:$0xf] %vm256_vm6, %v1292_v1  ;;  %467 = vxpose.xlu0.b32.cont [6/16] (narrow) %v410_v28, 16  ;;  %vm1651_vm6 = vcmask 68608  }
  0xd6   : > { %347 = vst.msk [vmem:[#allocation2 + $0x50] sm:$0xf] %vm244_vm5, %v345_v27  ;;  %vm1652_vm5 = vcmask 52224   ;;  %v413_v37 = vld [vmem:[#allocation2 + $0x40] sm:$0xff] }
  0xd7   : > { %348 = vst.msk [vmem:[#allocation2 + $0x50] sm:$0xf] %vm249_vm15, %v1292_v1  ;;  %vm1658_vm15 = vcmask 125984  }
  0xd8   : > { %372 = vst.msk [vmem:[#allocation2 + $0x64] sm:$0xf] %vm1652_vm5, %v370_v33  ;;  %vm831_vm5 = vcmask 1042434  }
  0xd9   : > { %373 = vst.msk [vmem:[#allocation2 + $0x64] sm:$0xf] %vm1653_vm11, %v1292_v1  ;;  %vm833_vm11 = vcmask 1043459  }
  0xdb   : > { %v365_v31 = vpop.permute.xlu1 %364  ;;  %v360_v32 = vpop.permute.xlu0 %359 }
  0xdc   : > { %367 = vst.msk [vmem:[#allocation2 + $0x60] sm:$0xf] %vm1649_vm0, %v365_v31  ;;  %vm647_vm0 = vcmask 1045508  }
  0xdd   : > { %368 = vst.msk [vmem:[#allocation2 + $0x60] sm:$0xf] %vm1650_vm7, %v1292_v1  ;;  %468 = vxpose.xlu0.b32.cont [7/16] (narrow) %v411_v30, 16  ;;  %vm650_vm7 = vcmask 1045504  }
  0xde   : > { %362 = vst.msk [vmem:[#allocation2 + $0x5c] sm:$0xf] %vm1651_vm6, %v360_v32  ;;  %v415_v43 = vld [vmem:[#allocation2 + $0x50] sm:$0xff]  ;;  %vm829_vm6 = vcmask 1041409  }
  0xdf   : > { %363 = vst.msk [vmem:[#allocation2 + $0x5c] sm:$0xf] %vm270_vm9, %v1292_v1  ;;  %vm1656_vm9 = vcmask 11264  }
  0xe3   : > { %v380_v34 = vpop.permute.xlu1 %379  ;;  %v375_v35 = vpop.permute.xlu0 %374 }
  0xe4   : > { %382 = vst.msk [vmem:[#allocation2 + $0x6c] sm:$0xf] %vm1654_vm12, %v380_v34  ;;  %v417_v53 = vld [vmem:[#allocation2 + $0x60] sm:$0xff]  ;;  %vm835_vm12 = vcmask 1044484  }
  0xe5   : > { %383 = vst.msk [vmem:[#allocation2 + $0x6c] sm:$0xf] %vm298_vm10, %v1292_v1  ;;  %469 = vxpose.xlu0.b32.cont [8/16] (narrow) %v412_v36, 16  ;;  %vm1657_vm10 = vcmask 27648  }
  0xe6   : > { %377 = vst.msk [vmem:[#allocation2 + $0x68] sm:$0xf] %vm1655_vm14, %v375_v35  ;;  %v416_v44 = vld [vmem:[#allocation2 + $0x58] sm:$0xff]  ;;  %vm837_vm14 = vcmask 1045509  }
  0xe7   : > { %378 = vst.msk [vmem:[#allocation2 + $0x68] sm:$0xf] %vm291_vm4, %v1292_v1  ;;  %vm1659_vm4 = vcmask 3072  }
  0xe8   : > { %387 = vst.msk [vmem:[#allocation2 + $0x70] sm:$0xf] %vm1657_vm10, %v385_v40  ;;  %vm841_vm10 = vcmask 1047559  }
  0xe9   : > { %388 = vst.msk [vmem:[#allocation2 + $0x70] sm:$0xf] %vm1658_vm15, %v1292_v1  ;;  %vm876_vm15 = vcmask 64512  }
  0xea   : > { %402 = vst.msk [vmem:[#allocation2 + $0x7c] sm:$0xf] %vm1659_vm4, %v400_v42 }
  0xeb   : > { %v395_v38 = vpop.permute.xlu1 %394  ;;  %v390_v39 = vpop.permute.xlu0 %389  ;;  %403 = vst.msk [vmem:[#allocation2 + $0x7c] sm:$0xf] %vm1660_vm1, %v1292_v1 }
  0xec   : > { %397 = vst.msk [vmem:[#allocation2 + $0x78] sm:$0xf] %vm1656_vm9, %v395_v38  ;;  %vm839_vm9 = vcmask 1046534  }
  0xed   : > { %398 = vst.msk [vmem:[#allocation2 + $0x78] sm:$0xf] %vm319_vm3, %v1292_v1  ;;  %470 = vxpose.xlu0.b32.cont [9/16] (narrow) %v413_v37, 16  ;;  %vm642_vm3 = vcmask 1041408  }
  0xee   : > { %392 = vst.msk [vmem:[#allocation2 + $0x74] sm:$0xf] %vm307_vm13, %v390_v39  ;;  %v418_v62 = vld [vmem:[#allocation2 + $0x68] sm:$0xff]  ;;  %vm526_vm13 = vcmask 31744  }
  0xef   : > { %393 = vst.msk [vmem:[#allocation2 + $0x74] sm:$0xf] %vm312_vm8, %v1292_v1  ;;  %v434_v1 = vld [vmem:[#allocation6 + $0x60] sm:$0xff]  ;;  %vm533_vm8 = vcmask 1043456  }
  0xf0   : > { %549 = vmatpush.msra.mxu0 %v434_v1  ;;  %995 = vmatpush.msk.msra.mxu1 %vm533_vm8, %v454_v17 }
  0xf1   : > { %998 = vmatpush.msk.msra.mxu3 %vm533_vm8, %v455_v18 }
  0xf2   : > { %550 = vmatpush.msra.mxu0 %v432_v3 }
  0xf4   : > { %551 = vmatpush.msra.mxu0 %v430_v5  ;;  %v420_v16 = vld [vmem:[#allocation2 + $0x78] sm:$0xff] }
  0xf5   : > { %471 = vxpose.xlu0.b32.cont [10/16] (narrow) %v414_v41, 16 }
  0xf6   : > { %v419_v7 = vld [vmem:[#allocation2 + $0x70] sm:$0xff]  ;;  %552 = vmatpush.msra.mxu0 %v428_v8 }
  0xf8   : > { %553 = vmatpush.msra.mxu0 %v426_v10 }
  0xfa   : > { %554 = vmatpush.msra.mxu0 %v424_v12 }
  0xfc   : > { %555 = vmatpush.msra.mxu0 %v422_v14 }
  0xfd   : > { %472 = vxpose.xlu0.b32.cont [11/16] (narrow) %v415_v43, 16 }
 0x105   : > { %473 = vxpose.xlu0.b32.cont [12/16] (narrow) %v416_v44, 16 }
 0x10d   : > { %474 = vxpose.xlu0.b32.cont [13/16] (narrow) %v417_v53, 16 }
 0x115   : > { %475 = vxpose.xlu0.b32.cont [14/16] (narrow) %v418_v62, 16 }
 0x11d   : > { %476 = vxpose.xlu0.b32.cont [15/16] (narrow) %v419_v7, 16 }
 0x125   : > { %477 = vxpose.xlu0.b32.end [16/16] (narrow) %v420_v16, 16 }
 0x151   : > { %v478_v19 = vpop.trf.xlu0 }
 0x152   : > { %556 = vmatmul.f32.vlgmr.msra.gmra.mxu0 %v478_v19  ;;  %602 = vmatmul.f32.vlgmr.msra.gmra.mxu2 %v478_v19  ;;  %v510_v20 = vpop.trf.xlu1 }
 0x153   : > { %996 = vmatmul.msk.f32.vlgmr.msra.gmra.mxu1 %vm526_vm13, %v510_v20  ;;  %999 = vmatmul.msk.f32.vlgmr.msra.gmra.mxu3 %vm526_vm13, %v510_v20 }
 0x159   : > { %v479_v21 = vpop.trf.xlu0 }
 0x15a   : > { %605 = vmatmul.f32.gmra.mxu2 %v479_v21  ;;  %v511_v22 = vpop.trf.xlu1  ;;  %559 = vmatmul.f32.gmra.mxu0 %v479_v21 }
 0x15b   : > { %1000 = vmatmul.msk.f32.gmra.mxu3 %vm526_vm13, %v511_v22  ;;  %997 = vmatmul.msk.f32.gmra.mxu1 %vm526_vm13, %v511_v22 }
 0x1cf   : > { %v557_v25 = vpop.f32.mrf.mxu0 }
 0x1d0   : > { %v558_v27 = vadd.f32 %v557_v25, %v458_v24  ;;  %v580_v28 = vpop.f32.mrf.mxu1 }
 0x1d2   : > { %v581_v32 = vadd.f32 %v580_v28, %v558_v27 }
 0x1d4   : > { %v632_v36 = vmax.f32 %v581_v32, 0.0 }
 0x1d5   : > { %v603_v29 = vpop.f32.mrf.mxu2 }
 0x1d6   : > { %v604_v30 = vadd.f32 %v603_v29, %v459_v26  ;;  %v626_v31 = vpop.f32.mrf.mxu3 }
 0x1d7   : > { %v560_v35 = vpop.f32.mrf.mxu0 }
 0x1d8   : > { %v627_v33 = vadd.f32 %v626_v31, %v604_v30  ;;  %v561_v39 = vadd.f32 %v560_v35, %v458_v24  ;;  %v583_v43 = vpop.f32.mrf.mxu1 }
 0x1da   : > { %v633_v34 = vmax.f32 %v627_v33, 0.0  ;;  %v584_v47 = vadd.f32 %v583_v43, %v561_v39 }
 0x1dc   : > { %v640_v37 = vrot.slane %v633_v34, 6  ;;  %v634_v53 = vmax.f32 %v584_v47, 0.0 }
 0x1dd   : > { %v606_v38 = vpop.f32.mrf.mxu2 }
 0x1de   : > { %v643_v40 = vsel %vm642_vm3, %v632_v36, %v640_v37  ;;  %v645_v41 = vsel %vm644_vm2, %v632_v36, %v640_v37  ;;  %v629_v42 = vpop.f32.mrf.mxu3  ;;  %v607_v45 = vadd.f32 %v606_v38, %v459_v26  ;;  %v648_v48 = vsel %vm647_vm0, %v632_v36, %v640_v37 }
 0x1df   : > { %v646_v44 = vrot.slane %v645_v41, 2  ;;  %660 = vst [vmem:[#allocation1] ss:$4 sm:$0xff] %v643_v40  ;;  %v651_v50 = vsel %vm650_vm7, %v640_v37, %v632_v36  ;;  %v649_v51 = vrot.slane %v648_v48, 4 }
 0x1e0   : > { %v630_v46 = vadd.f32 %v629_v42, %v607_v45  ;;  %v652_v56 = vrot.slane %v651_v50, 6 }
 0x1e1   : > { %664 = vst [vmem:[#allocation1 + $0x20] ss:$4 sm:$0xff] %v646_v44 }
 0x1e2   : > { %v635_v49 = vmax.f32 %v630_v46, 0.0 }
 0x1e4   : > { %v641_v52 = vrot.slane %v635_v49, 6 }
 0x1e6   : > { %v661_v54 = vld.sshfl [vmem:[#allocation1] sm:$0xff pattern:$0x73625140]  ;;  %v662_v55 = vld.sshfl [vmem:[#allocation1 + $0x8] sm:$0xff pattern:$0x73625140]  ;;  %v654_v59 = vsel %vm644_vm2, %v634_v53, %v641_v52  ;;  %v653_v9 = vsel %vm642_vm3, %v634_v53, %v641_v52  ;;  %v656_v16 = vsel %vm647_vm0, %v634_v53, %v641_v52  ;;  %v658_v17 = vsel %vm650_vm7, %v641_v52, %v634_v53 }
 0x1e7   : > { %667 = vst [vmem:[#allocation1] ss:$4 sm:$0xff] %v649_v51  ;;  %v701_v60 = vsel %vm642_vm3, %v661_v54, -inf  ;;  %v708_v62 = vsel %vm642_vm3, %v662_v55, -inf  ;;  %v655_v5 = vrot.slane %v654_v59, 2  ;;  %v657_v36 = vrot.slane %v656_v16, 4 }
 0x1e8   : > { %v665_v57 = vld.sshfl [vmem:[#allocation1 + $0x20] sm:$0xff pattern:$0x73625140]  ;;  %v666_v58 = vld.sshfl [vmem:[#allocation1 + $0x28] sm:$0xff pattern:$0x73625140] }
 0x1e9   : > { %670 = vst [vmem:[#allocation1 + $0x20] ss:$4 sm:$0xff] %v652_v56  ;;  %v702_v61 = vrot.slane %v701_v60, 4  ;;  %v715_v63 = vsel %vm642_vm3, %v665_v57, -inf  ;;  %v722_v0 = vsel %vm642_vm3, %v666_v58, -inf  ;;  %v709_v1 = vrot.slane %v708_v62, 4 }
 0x1ea   : > { %v716_v2 = vrot.slane %v715_v63, 4  ;;  %v723_v3 = vrot.slane %v722_v0, 4  ;;  %v659_v43 = vrot.slane %v658_v17, 6 }
 0x1eb   : > { %v703_v4 = vmax.f32 %v701_v60, %v702_v61  ;;  %v710_v6 = vmax.f32 %v708_v62, %v709_v1 }
 0x1ec   : > { %v717_v7 = vmax.f32 %v715_v63, %v716_v2  ;;  %v724_v8 = vmax.f32 %v722_v0, %v723_v3 }
 0x1ed   : > { %v704_v12 = vrot.slane %v703_v4, 2  ;;  %v711_v13 = vrot.slane %v710_v6, 2 }
 0x1ee   : > { %v668_v10 = vld.sshfl [vmem:[#allocation1] sm:$0xff pattern:$0x73625140]  ;;  %v669_v11 = vld.sshfl [vmem:[#allocation1 + $0x8] sm:$0xff pattern:$0x73625140] }
 0x1ef   : > { %673 = vst [vmem:[#allocation1] ss:$4 sm:$0xff] %v653_v9  ;;  %v718_v14 = vrot.slane %v717_v7, 2  ;;  %v725_v15 = vrot.slane %v724_v8, 2  ;;  %v705_v20 = vmax.f32 %v703_v4, %v704_v12  ;;  %v712_v21 = vmax.f32 %v710_v6, %v711_v13 }
 0x1f0   : > { %v671_v18 = vld.sshfl [vmem:[#allocation1 + $0x20] sm:$0xff pattern:$0x73625140]  ;;  %v672_v19 = vld.sshfl [vmem:[#allocation1 + $0x28] sm:$0xff pattern:$0x73625140] }
 0x1f1   : > { %676 = vst [vmem:[#allocation1 + $0x20] ss:$4 sm:$0xff] %v655_v5  ;;  %v719_v22 = vmax.f32 %v717_v7, %v718_v14  ;;  %v726_v23 = vmax.f32 %v724_v8, %v725_v15  ;;  %v729_v24 = vsel %vm642_vm3, %v668_v10, -inf  ;;  %v736_v25 = vsel %vm642_vm3, %v669_v11, -inf }
 0x1f2   : > { %v743_v26 = vsel %vm642_vm3, %v671_v18, -inf  ;;  %v750_v27 = vsel %vm642_vm3, %v672_v19, -inf  ;;  %v706_v28 = vrot.slane %v705_v20, 1  ;;  %v713_v29 = vrot.slane %v712_v21, 1 }
 0x1f3   : > { %v720_v30 = vrot.slane %v719_v22, 1  ;;  %v727_v31 = vrot.slane %v726_v23, 1  ;;  %v730_v32 = vrot.slane %v729_v24, 4  ;;  %v737_v33 = vrot.slane %v736_v25, 4 }
 0x1f4   : > { %v744_v34 = vrot.slane %v743_v26, 4  ;;  %v751_v35 = vrot.slane %v750_v27, 4  ;;  %v707_v48 = vmax.f32 %v705_v20, %v706_v28  ;;  %v714_v49 = vmax.f32 %v712_v21, %v713_v29 }
 0x1f5   : > { %v731_v39 = vmax.f32 %v729_v24, %v730_v32  ;;  %v738_v40 = vmax.f32 %v736_v25, %v737_v33  ;;  %v721_v50 = vmax.f32 %v719_v22, %v720_v30  ;;  %v728_v51 = vmax.f32 %v726_v23, %v727_v31 }
 0x1f6   : > { %v674_v37 = vld.sshfl [vmem:[#allocation1] sm:$0xff pattern:$0x73625140]  ;;  %v675_v38 = vld.sshfl [vmem:[#allocation1 + $0x8] sm:$0xff pattern:$0x73625140]  ;;  %v745_v41 = vmax.f32 %v743_v26, %v744_v34  ;;  %v752_v42 = vmax.f32 %v750_v27, %v751_v35  ;;  %v813_v12 = vadd.f32 %v714_v49, %v707_v48 }
 0x1f7   : > { %679 = vst [vmem:[#allocation1] ss:$4 sm:$0xff] %v657_v36  ;;  %v757_v44 = vsel %vm642_vm3, %v674_v37, -inf  ;;  %v764_v45 = vsel %vm642_vm3, %v675_v38, -inf  ;;  %v732_v52 = vrot.slane %v731_v39, 2  ;;  %v739_v53 = vrot.slane %v738_v40, 2 }
 0x1f8   : > { %v677_v46 = vld.sshfl [vmem:[#allocation1 + $0x20] sm:$0xff pattern:$0x73625140]  ;;  %v678_v47 = vld.sshfl [vmem:[#allocation1 + $0x28] sm:$0xff pattern:$0x73625140]  ;;  %v814_v13 = vadd.f32 %v728_v51, %v721_v50 }
 0x1f9   : > { %682 = vst [vmem:[#allocation1 + $0x20] ss:$4 sm:$0xff] %v659_v43  ;;  %v746_v54 = vrot.slane %v745_v41, 2  ;;  %v753_v55 = vrot.slane %v752_v42, 2  ;;  %v758_v56 = vrot.slane %v757_v44, 4  ;;  %v765_v57 = vrot.slane %v764_v45, 4 }
 0x1fa   : > { %v771_v58 = vsel %vm642_vm3, %v677_v46, -inf  ;;  %v778_v59 = vsel %vm642_vm3, %v678_v47, -inf  ;;  %v733_v60 = vmax.f32 %v731_v39, %v732_v52  ;;  %v740_v61 = vmax.f32 %v738_v40, %v739_v53 }
 0x1fb   : > { %v747_v62 = vmax.f32 %v745_v41, %v746_v54  ;;  %v754_v63 = vmax.f32 %v752_v42, %v753_v55  ;;  %v759_v0 = vmax.f32 %v757_v44, %v758_v56  ;;  %v766_v1 = vmax.f32 %v764_v45, %v765_v57 }
 0x1fc   : > { %v772_v2 = vrot.slane %v771_v58, 4  ;;  %v779_v3 = vrot.slane %v778_v59, 4  ;;  %v734_v4 = vrot.slane %v733_v60, 1  ;;  %v741_v5 = vrot.slane %v740_v61, 1 }
 0x1fd   : > { %v748_v6 = vrot.slane %v747_v62, 1  ;;  %v755_v7 = vrot.slane %v754_v63, 1  ;;  %v760_v20 = vrot.slane %v759_v0, 2  ;;  %v767_v21 = vrot.slane %v766_v1, 2 }
 0x1fe   : > { %v773_v8 = vmax.f32 %v771_v58, %v772_v2  ;;  %v780_v9 = vmax.f32 %v778_v59, %v779_v3  ;;  %v680_v10 = vld.sshfl [vmem:[#allocation1] sm:$0xff pattern:$0x73625140]  ;;  %v681_v11 = vld.sshfl [vmem:[#allocation1 + $0x8] sm:$0xff pattern:$0x73625140]  ;;  %v735_v16 = vmax.f32 %v733_v60, %v734_v4  ;;  %v742_v17 = vmax.f32 %v740_v61, %v741_v5 }
 0x1ff   : > { %v749_v18 = vmax.f32 %v747_v62, %v748_v6  ;;  %v756_v19 = vmax.f32 %v754_v63, %v755_v7  ;;  %v785_v24 = vsel %vm642_vm3, %v680_v10, -inf  ;;  %v792_v25 = vsel %vm642_vm3, %v681_v11, -inf }
 0x200   : > { %v683_v14 = vld.sshfl [vmem:[#allocation1 + $0x20] sm:$0xff pattern:$0x73625140]  ;;  %v684_v15 = vld.sshfl [vmem:[#allocation1 + $0x28] sm:$0xff pattern:$0x73625140]  ;;  %v761_v28 = vmax.f32 %v759_v0, %v760_v20  ;;  %v768_v29 = vmax.f32 %v766_v1, %v767_v21  ;;  %v830_v46 = vsel %vm829_vm6, %v814_v13, %v813_v12  ;;  %v815_v53 = vadd.f32 %v742_v17, %v735_v16 }
 0x201   : > { %v774_v22 = vrot.slane %v773_v8, 2  ;;  %v781_v23 = vrot.slane %v780_v9, 2  ;;  %v799_v26 = vsel %vm642_vm3, %v683_v14, -inf  ;;  %v806_v27 = vsel %vm642_vm3, %v684_v15, -inf }
 0x202   : > { %v786_v32 = vrot.slane %v785_v24, 4  ;;  %v793_v33 = vrot.slane %v792_v25, 4  ;;  %v800_v34 = vrot.slane %v799_v26, 4  ;;  %v807_v35 = vrot.slane %v806_v27, 4 }
 0x203   : > { %v775_v30 = vmax.f32 %v773_v8, %v774_v22  ;;  %v782_v31 = vmax.f32 %v780_v9, %v781_v23  ;;  %v762_v36 = vrot.slane %v761_v28, 1  ;;  %v769_v37 = vrot.slane %v768_v29, 1 }
 0x204   : > { %v787_v40 = vmax.f32 %v785_v24, %v786_v32  ;;  %v794_v41 = vmax.f32 %v792_v25, %v793_v33  ;;  %v801_v42 = vmax.f32 %v799_v26, %v800_v34  ;;  %v808_v43 = vmax.f32 %v806_v27, %v807_v35 }
 0x205   : > { %v776_v38 = vrot.slane %v775_v30, 1  ;;  %v783_v39 = vrot.slane %v782_v31, 1  ;;  %v763_v44 = vmax.f32 %v761_v28, %v762_v36  ;;  %v770_v45 = vmax.f32 %v768_v29, %v769_v37 }
 0x206   : > { %v788_v47 = vrot.slane %v787_v40, 2  ;;  %v795_v48 = vrot.slane %v794_v41, 2  ;;  %v802_v49 = vrot.slane %v801_v42, 2  ;;  %v809_v50 = vrot.slane %v808_v43, 2 }
 0x207   : > { %v777_v51 = vmax.f32 %v775_v30, %v776_v38  ;;  %v784_v52 = vmax.f32 %v782_v31, %v783_v39  ;;  %v816_v54 = vadd.f32 %v756_v19, %v749_v18  ;;  %v817_v59 = vadd.f32 %v770_v45, %v763_v44 }
 0x208   : > { %v789_v55 = vmax.f32 %v787_v40, %v788_v47  ;;  %v796_v56 = vmax.f32 %v794_v41, %v795_v48  ;;  %v803_v57 = vmax.f32 %v801_v42, %v802_v49  ;;  %v810_v58 = vmax.f32 %v808_v43, %v809_v50 }
 0x209   : > { %v832_v60 = vsel %vm831_vm5, %v815_v53, %v830_v46  ;;  %v818_v1 = vadd.f32 %v784_v52, %v777_v51 }
 0x20a   : > { %v790_v61 = vrot.slane %v789_v55, 1  ;;  %v797_v62 = vrot.slane %v796_v56, 1  ;;  %v804_v63 = vrot.slane %v803_v57, 1  ;;  %v811_v0 = vrot.slane %v810_v58, 1 }
 0x20b   : > { %v834_v2 = vsel %vm833_vm11, %v816_v54, %v832_v60 }
 0x20c   : > { %v791_v3 = vmax.f32 %v789_v55, %v790_v61  ;;  %v798_v4 = vmax.f32 %v796_v56, %v797_v62  ;;  %v805_v5 = vmax.f32 %v803_v57, %v804_v63  ;;  %v812_v6 = vmax.f32 %v810_v58, %v811_v0 }
 0x20d   : > { %v836_v7 = vsel %vm835_vm12, %v817_v59, %v834_v2 }
 0x20e   : > { %v819_v8 = vadd.f32 %v798_v4, %v791_v3  ;;  %v820_v9 = vadd.f32 %v812_v6, %v805_v5  ;;  %v838_v10 = vsel %vm837_vm14, %v818_v1, %v836_v7 }
 0x210   : > { %v840_v11 = vsel %vm839_vm9, %v819_v8, %v838_v10 }
 0x211   : > { %v842_v12 = vsel %vm841_vm10, %v820_v9, %v840_v11 }
 0x212   : > { %844 = vxpose.xlu2.b32.start.end [1/1] (short) (narrow) %v842_v12, 8 }
 0x2ab   : > { %v860_v13 = vpop.trf.xlu2 }
 0x2ac   : > { %877 = vst.msk [vmem:[%s218_s24] sm:$0xff] %vm876_vm15, %v860_v13 }
 0x2ad   : > { %1225 = shalt.err (!%p1222_p9)
}
 0x2ae   : > { %1018 = dma.vmem_to_hbm [thread:$0]  (%p1394_p4), %s892_s25, 128, %s894_s26, %s879_s9  }
 0x2af PF: > { %s905_s10 = sand.u32 1, %s1256_s12   ;;  %p1661_p10 = scmp.ge.s32.totalorder %s1268_s15, 2 }
 0x2b0   : > { %s906_s17 = scalar_lea.sflag [#allocation5], %s905_s10 }
 0x2b1   : > { %p1032_p13 = pnand %p1661_p10, %p1398_p6 }
 0x2b3   : > { %p1033_p11 = pneg %p1032_p13 }
 0x2b5   : > { %1251 = dma.done.wait (%p1033_p11), %s906_s17, 128  }
 0x2b6   : > { %1253 = vsyncadd (%p1033_p11), %s906_s17, 4294967168  ;;  %p17_p0 = scmp.ge.s32.totalorder %s1368_s4, 4   ;;  %s1662_s12 = smov %s1260_s13 }
 0x2b7   : > { %s1663_s13 = smov %s1264_s14  ;;  %s1664_s14 = smov %s1379_s7 }
 0x2b8   : > { %s1665_s15 = smov %s1368_s4  ;;  %19 = sbr.rel (!%p17_p0) target bundleno = 6 (0x6), region = 86 }
 0x2bd   :  { %912 = vsyncpa [#allocation4], 1 }
 0x2be   :  { %914 = vsyncpa [#allocation4 + $0x1], 1 }
 0x2bf   :  { %915 = vsyncpa [#allocation7], 1 }
 0x2c0   :  { %916 = vsyncpa [#allocation5], 1 }
 0x2c1   :  { %918 = vsyncpa [#allocation5 + $0x1], 1 }

</bundles_post_ra>
